<compile_context>
chip_gen: v5e
topology: v5e:2x2
jax: 0.10.0
libtpu: 0.0.40
codegen_flags: <defaults>
</compile_context>

<pallas_src>
from functools import partial

import jax
import jax.numpy as jnp
from jax import lax
from jax.experimental import pallas as pl
from jax.experimental.pallas import tpu as pltpu


def _up2x_matrix(in_size):
    """(2*in, in) matrix of PyTorch bilinear 2x weights (align_corners=False)."""
    out_size = 2 * in_size
    s = (jnp.arange(out_size, dtype=jnp.float32) + 0.5) * (in_size / out_size) - 0.5
    s = jnp.maximum(s, 0.0)                               # PyTorch clamps negative src
    i0 = jnp.minimum(jnp.floor(s).astype(jnp.int32), in_size - 1)
    i1 = jnp.minimum(i0 + 1, in_size - 1)
    w1 = s - i0.astype(jnp.float32)
    return (jax.nn.one_hot(i0, in_size, dtype=jnp.float32) * (1.0 - w1)[:, None]
            + jax.nn.one_hot(i1, in_size, dtype=jnp.float32) * w1[:, None])


def _bilinear_up2x_nchw(x):
    """Reference: F.interpolate(x, scale_factor=2, mode='bilinear', align_corners=False)."""
    N, C, H, W = x.shape

    def src_index(in_size):
        out_size = 2 * in_size
        s = (jnp.arange(out_size, dtype=jnp.float32) + 0.5) * (in_size / out_size) - 0.5
        s = jnp.maximum(s, 0.0)
        i0 = jnp.minimum(jnp.floor(s).astype(jnp.int32), in_size - 1)
        i1 = jnp.minimum(i0 + 1, in_size - 1)
        w1 = s - i0.astype(jnp.float32)
        return i0, i1, w1

    hi0, hi1, hw1 = src_index(H)
    wi0, wi1, ww1 = src_index(W)
    rows = (x[:, :, hi0, :] * (1.0 - hw1)[None, None, :, None]
            + x[:, :, hi1, :] * hw1[None, None, :, None])
    return (rows[:, :, :, wi0] * (1.0 - ww1)[None, None, None, :]
            + rows[:, :, :, wi1] * ww1[None, None, None, :])


def _fused_kernel(x_ref, kt_ref, skip_ref, mneg_ref, mpos_ref, w_ref, b_ref,
                  o_ref, src_ref, patch_ref, *, c_in, width2, s2, pad):
    """Per-image fused bilinear-2x-upsample + skip-add + 3x3 conv.

    x_ref:     (C_in, H*W)        f32   low-res image (flat spatial in lanes)
    kt_ref:    (H*W, H2*W2)       f32   separable 2x-upsample matrix (kron)
    skip_ref:  (C_in, H2*W2)      f32
    mneg_ref:  (1, H2*W2)         bf16  zero mask for the dw = -1 taps
    mpos_ref:  (1, H2*W2)         bf16  zero mask for the dw = +1 taps
    w_ref:     (C_out, 9*C_in)    bf16  conv weights, taps folded into K
    b_ref:     (C_out, 1)         f32
    o_ref:     (C_out, H2*W2)     f32   NCHW-flat output block
    src_ref:   (3*C_in, Lpad)     bf16  halo-padded, border-masked image x3
    patch_ref: (9*C_in, H2*W2)    bf16  im2col-in-VMEM patch (never in HBM)
    """
    # ---- bilinear 2x upsample (one small MXU dot) + skip add, all in VMEM ---
    u = jnp.dot(x_ref[...], kt_ref[...], preferred_element_type=jnp.float32)
    u = u + skip_ref[...]
    ub = u.astype(src_ref.dtype)                        # bf16 MXU operand

    # ---- three border-masked, lane-padded copies (one per kw tap) -----------
    src_ref[...] = jnp.zeros_like(src_ref)              # zero the halo lanes
    src_ref[pl.ds(0 * c_in, c_in), pl.ds(pad, s2)] = ub * mneg_ref[...]   # dw = -1
    src_ref[pl.ds(1 * c_in, c_in), pl.ds(pad, s2)] = ub                   # dw =  0
    src_ref[pl.ds(2 * c_in, c_in), pl.ds(pad, s2)] = ub * mpos_ref[...]   # dw = +1

    # ---- fold the 9 taps into the contraction dim: patch (9*C_in, H2*W2) ----
    for kh in range(3):
        for kw in range(3):
            start = pad + (kh - 1) * width2 + (kw - 1)   # static lane offset
            tap = kh * 3 + kw
            patch_ref[pl.ds(tap * c_in, c_in), :] = (
                src_ref[pl.ds(kw * c_in, c_in), pl.ds(start, s2)])

    # ---- single MXU contraction over K = 9*C_in, one accumulator drain ------
    out = jnp.dot(w_ref[...], patch_ref[...], preferred_element_type=jnp.float32)
    o_ref[...] = (out + b_ref[...]).astype(o_ref.dtype)


def upsample_block(x, skip_connection, weight, bias, *, compute_dtype=jnp.bfloat16):
    """Equivalent of PyTorch UpsampleBlock.forward(x, skip_connection)."""
    N, C_in, H, W = x.shape
    C_out = weight.shape[0]
    H2, W2 = 2 * H, 2 * W
    assert skip_connection.shape == (N, C_in, H2, W2)
    S, S2 = H * W, H2 * W2
    PAD = W2 + 1                      # halo so every (kh, kw) shift stays in-bounds
    LPAD = S2 + 2 * PAD

    # ---- tiny constants (upsample matrix, border masks, weights, bias) ------
    kt = jnp.kron(_up2x_matrix(H), _up2x_matrix(W)).T            # (S, S2) f32
    col = jnp.arange(S2, dtype=jnp.int32) % W2
    mneg = (col != W2 - 1).astype(compute_dtype).reshape(1, S2)  # for dw = -1 taps
    mpos = (col != 0).astype(compute_dtype).reshape(1, S2)       # for dw = +1 taps
    w_mat = jnp.transpose(weight, (0, 2, 3, 1)).reshape(C_out, 9 * C_in)
    w_mat = w_mat.astype(compute_dtype)
    b_mat = bias.reshape(C_out, 1).astype(jnp.float32)

    # ---- big activations: free bitcast reshapes only (no HBM passes) --------
    x_flat = x.reshape(N, C_in, S).astype(jnp.float32)
    skip_flat = skip_connection.reshape(N, C_in, S2).astype(jnp.float32)

    kernel = partial(_fused_kernel, c_in=C_in, width2=W2, s2=S2, pad=PAD)

    flops = 2 * N * (C_in * S * S2 + C_out * 9 * C_in * S2)
    bytes_accessed = (x_flat.size * 4 + kt.size * 4 + skip_flat.size * 4
                      + (mneg.size + mpos.size + w_mat.size) * 2
                      + b_mat.size * 4 + N * C_out * S2 * 4)

    out_flat = pl.pallas_call(
        kernel,
        out_shape=jax.ShapeDtypeStruct((N, C_out, S2), jnp.float32),
        grid_spec=pltpu.PrefetchScalarGridSpec(
            num_scalar_prefetch=0,
            grid=(N,),
            in_specs=[
                pl.BlockSpec((None, C_in, S), lambda n: (n, 0, 0)),     # x (per image)
                pl.BlockSpec((S, S2), lambda n: (0, 0)),                # upsample matrix
                pl.BlockSpec((None, C_in, S2), lambda n: (n, 0, 0)),    # skip (per image)
                pl.BlockSpec((1, S2), lambda n: (0, 0)),                # mask dw=-1
                pl.BlockSpec((1, S2), lambda n: (0, 0)),                # mask dw=+1
                pl.BlockSpec((C_out, 9 * C_in), lambda n: (0, 0)),      # weights
                pl.BlockSpec((C_out, 1), lambda n: (0, 0)),             # bias
            ],
            out_specs=pl.BlockSpec((None, C_out, S2), lambda n: (n, 0, 0)),
            scratch_shapes=[
                pltpu.VMEM((3 * C_in, LPAD), compute_dtype),            # halo-padded image
                pltpu.VMEM((9 * C_in, S2), compute_dtype),              # VMEM-only patch
            ],
        ),
        compiler_params=pltpu.CompilerParams(
            dimension_semantics=("parallel",),      # per-image steps shard across cores
            vmem_limit_bytes=32 * 1024 * 1024,
        ),
        cost_estimate=pl.CostEstimate(
            flops=flops, transcendentals=0, bytes_accessed=bytes_accessed),
    )(x_flat, kt, skip_flat, mneg, mpos, w_mat, b_mat)

    # NCHW result is a free reshape (no slice, no transpose, no lane padding).
    return out_flat.reshape(N, C_out, H2, W2)


if __name__ == "__main__":
    key = jax.random.PRNGKey(0)
    k_x, k_s, k_w, k_b = jax.random.split(key, 4)

    N, C_in, C_out, H, W = 2, 4, 8, 16, 16
    x = jax.random.normal(k_x, (N, C_in, H, W), dtype=jnp.float32)
    skip = jax.random.normal(k_s, (N, C_in, 2 * H, 2 * W), dtype=jnp.float32)

    fan_in = C_in * 3 * 3
    bound = 1.0 / (fan_in ** 0.5)
    weight = jax.random.uniform(k_w, (C_out, C_in, 3, 3), jnp.float32, -bound, bound)
    bias = jax.random.uniform(k_b, (C_out,), jnp.float32, -bound, bound)

    fwd = jax.jit(upsample_block)
    out = jax.block_until_ready(fwd(x, skip, weight, bias))

    # ---- references ----
    y = _bilinear_up2x_nchw(x) + skip
    dn = ("NCHW", "OIHW", "NCHW")
    ref_f32 = lax.conv_general_dilated(
        y, weight, window_strides=(1, 1), padding=((1, 1), (1, 1)),
        dimension_numbers=dn) + bias[None, :, None, None]
    # bf16-matched reference (kernel feeds bf16 operands to the MXU, f32 accum)
    yb = y.astype(jnp.bfloat16).astype(jnp.float32)
    wb = weight.astype(jnp.bfloat16).astype(jnp.float32)
    ref_bf16 = lax.conv_general_dilated(
        yb, wb, window_strides=(1, 1), padding=((1, 1), (1, 1)),
        dimension_numbers=dn) + bias[None, :, None, None]

    assert out.shape == ref_f32.shape == (N, C_out, 2 * H, 2 * W)
    err_bf16 = float(jnp.max(jnp.abs(out - ref_bf16)))
    err_f32 = float(jnp.max(jnp.abs(out - ref_f32)))
    assert err_bf16 < 1e-2, f"bf16-matched error too large: {err_bf16}"
    assert err_f32 < 1e-1, f"f32 reference error too large: {err_f32}"

    print("KERNEL_OK")
</pallas_src>

<mosaic_0001>
module attributes {stable_mosaic.version = 11 : i64} {
  func.func @_fused_kernel(%arg0: i32, %arg1: memref<1x4x256xf32, #tpu.memory_space<vmem>>, %arg2: memref<256x1024xf32, #tpu.memory_space<vmem>>, %arg3: memref<1x4x1024xf32, #tpu.memory_space<vmem>>, %arg4: memref<1x1024xbf16, #tpu.memory_space<vmem>>, %arg5: memref<1x1024xbf16, #tpu.memory_space<vmem>>, %arg6: memref<8x36xbf16, #tpu.memory_space<vmem>>, %arg7: memref<8x1xf32, #tpu.memory_space<vmem>>, %arg8: memref<1x8x1024xf32, #tpu.memory_space<vmem>>, %arg9: memref<12x1090xbf16, #tpu.memory_space<vmem>>, %arg10: memref<36x1024xbf16, #tpu.memory_space<vmem>>) attributes {dimension_semantics = [#tpu.dimension_semantics<parallel>], iteration_bounds = array<i64: 2>, scalar_prefetch = 0 : i64, scratch_operands = 2 : i64, tpu.core_type = #tpu.core_type<tc>, window_params = [{transform_indices = @transform_0, window_bounds = array<i64: 1, 4, 256>}, {pipeline_mode = #tpu.pipeline_mode<synchronous>, transform_indices = @transform_1, window_bounds = array<i64: 256, 1024>}, {transform_indices = @transform_2, window_bounds = array<i64: 1, 4, 1024>}, {pipeline_mode = #tpu.pipeline_mode<synchronous>, transform_indices = @transform_3, window_bounds = array<i64: 1, 1024>}, {pipeline_mode = #tpu.pipeline_mode<synchronous>, transform_indices = @transform_4, window_bounds = array<i64: 1, 1024>}, {pipeline_mode = #tpu.pipeline_mode<synchronous>, transform_indices = @transform_5, window_bounds = array<i64: 8, 36>}, {pipeline_mode = #tpu.pipeline_mode<synchronous>, transform_indices = @transform_6, window_bounds = array<i64: 8, 1>}, {transform_indices = @transform_7, window_bounds = array<i64: 1, 8, 1024>}]} {
    %c0 = arith.constant 0 : index
    %c0_0 = arith.constant 0 : index
    %c0_1 = arith.constant 0 : index
    %0 = vector.load %arg1[%c0, %c0_0, %c0_1] : memref<1x4x256xf32, #tpu.memory_space<vmem>>, vector<1x4x256xf32>
    %1 = vector.shape_cast %0 : vector<1x4x256xf32> to vector<4x256xf32>
    %c0_2 = arith.constant 0 : index
    %c0_3 = arith.constant 0 : index
    %2 = vector.load %arg2[%c0_2, %c0_3] : memref<256x1024xf32, #tpu.memory_space<vmem>>, vector<256x1024xf32>
    %cst = arith.constant dense<0.000000e+00> : vector<4x1024xf32>
    %3 = tpu.matmul %1, %2, %cst {dimension_numbers = #tpu.dot_dimension_numbers<[1], [0], [0], [1], [0, 0, 1, 1], [], []>} : vector<4x256xf32>, vector<256x1024xf32>, vector<4x1024xf32> -> vector<4x1024xf32>
    %c0_4 = arith.constant 0 : index
    %c0_5 = arith.constant 0 : index
    %c0_6 = arith.constant 0 : index
    %4 = vector.load %arg3[%c0_4, %c0_5, %c0_6] : memref<1x4x1024xf32, #tpu.memory_space<vmem>>, vector<1x4x1024xf32>
    %5 = vector.shape_cast %4 : vector<1x4x1024xf32> to vector<4x1024xf32>
    %6 = arith.addf %3, %5 : vector<4x1024xf32>
    %7 = arith.truncf %6 : vector<4x1024xf32> to vector<4x1024xbf16>
    %cst_7 = arith.constant 0.000000e+00 : bf16
    %8 = vector.broadcast %cst_7 : bf16 to vector<12x1090xbf16>
    %c0_8 = arith.constant 0 : index
    %c0_9 = arith.constant 0 : index
    %9 = vector.load %arg9[%c0_8, %c0_9] : memref<12x1090xbf16, #tpu.memory_space<vmem>>, vector<12x1090xbf16>
    tpu.vector_store %arg9[%c0_8, %c0_9], %8 {strides = array<i32>} : memref<12x1090xbf16, #tpu.memory_space<vmem>>, vector<12x1090xbf16>,
    %c0_10 = arith.constant 0 : index
    %c0_11 = arith.constant 0 : index
    %10 = vector.load %arg4[%c0_10, %c0_11] : memref<1x1024xbf16, #tpu.memory_space<vmem>>, vector<1x1024xbf16>
    %11 = vector.broadcast %10 : vector<1x1024xbf16> to vector<4x1024xbf16>
    %12 = arith.mulf %7, %11 : vector<4x1024xbf16>
    %c0_12 = arith.constant 0 : index
    %c33 = arith.constant 33 : index
    %13 = vector.load %arg9[%c0_12, %c33] : memref<12x1090xbf16, #tpu.memory_space<vmem>>, vector<4x1024xbf16>
    tpu.vector_store %arg9[%c0_12, %c33], %12 {strides = array<i32>} : memref<12x1090xbf16, #tpu.memory_space<vmem>>, vector<4x1024xbf16>,
    %c4 = arith.constant 4 : index
    %c33_13 = arith.constant 33 : index
    %14 = vector.load %arg9[%c4, %c33_13] : memref<12x1090xbf16, #tpu.memory_space<vmem>>, vector<4x1024xbf16>
    tpu.vector_store %arg9[%c4, %c33_13], %7 {strides = array<i32>} : memref<12x1090xbf16, #tpu.memory_space<vmem>>, vector<4x1024xbf16>,
    %c0_14 = arith.constant 0 : index
    %c0_15 = arith.constant 0 : index
    %15 = vector.load %arg5[%c0_14, %c0_15] : memref<1x1024xbf16, #tpu.memory_space<vmem>>, vector<1x1024xbf16>
    %16 = vector.broadcast %15 : vector<1x1024xbf16> to vector<4x1024xbf16>
    %17 = arith.mulf %7, %16 : vector<4x1024xbf16>
    %c8 = arith.constant 8 : index
    %c33_16 = arith.constant 33 : index
    %18 = vector.load %arg9[%c8, %c33_16] : memref<12x1090xbf16, #tpu.memory_space<vmem>>, vector<4x1024xbf16>
    tpu.vector_store %arg9[%c8, %c33_16], %17 {strides = array<i32>} : memref<12x1090xbf16, #tpu.memory_space<vmem>>, vector<4x1024xbf16>,
    %c0_17 = arith.constant 0 : index
    %c0_18 = arith.constant 0 : index
    %19 = vector.load %arg9[%c0_17, %c0_18] : memref<12x1090xbf16, #tpu.memory_space<vmem>>, vector<4x1024xbf16>
    %c0_19 = arith.constant 0 : index
    %c0_20 = arith.constant 0 : index
    %20 = vector.load %arg10[%c0_19, %c0_20] : memref<36x1024xbf16, #tpu.memory_space<vmem>>, vector<4x1024xbf16>
    tpu.vector_store %arg10[%c0_19, %c0_20], %19 {strides = array<i32>} : memref<36x1024xbf16, #tpu.memory_space<vmem>>, vector<4x1024xbf16>,
    %c4_21 = arith.constant 4 : index
    %c1 = arith.constant 1 : index
    %21 = vector.load %arg9[%c4_21, %c1] : memref<12x1090xbf16, #tpu.memory_space<vmem>>, vector<4x1024xbf16>
    %c4_22 = arith.constant 4 : index
    %c0_23 = arith.constant 0 : index
    %22 = vector.load %arg10[%c4_22, %c0_23] : memref<36x1024xbf16, #tpu.memory_space<vmem>>, vector<4x1024xbf16>
    tpu.vector_store %arg10[%c4_22, %c0_23], %21 {strides = array<i32>} : memref<36x1024xbf16, #tpu.memory_space<vmem>>, vector<4x1024xbf16>,
    %c8_24 = arith.constant 8 : index
    %c2 = arith.constant 2 : index
    %23 = vector.load %arg9[%c8_24, %c2] : memref<12x1090xbf16, #tpu.memory_space<vmem>>, vector<4x1024xbf16>
    %c8_25 = arith.constant 8 : index
    %c0_26 = arith.constant 0 : index
    %24 = vector.load %arg10[%c8_25, %c0_26] : memref<36x1024xbf16, #tpu.memory_space<vmem>>, vector<4x1024xbf16>
    tpu.vector_store %arg10[%c8_25, %c0_26], %23 {strides = array<i32>} : memref<36x1024xbf16, #tpu.memory_space<vmem>>, vector<4x1024xbf16>,
    %c0_27 = arith.constant 0 : index
    %c32 = arith.constant 32 : index
    %25 = vector.load %arg9[%c0_27, %c32] : memref<12x1090xbf16, #tpu.memory_space<vmem>>, vector<4x1024xbf16>
    %c12 = arith.constant 12 : index
    %c0_28 = arith.constant 0 : index
    %26 = vector.load %arg10[%c12, %c0_28] : memref<36x1024xbf16, #tpu.memory_space<vmem>>, vector<4x1024xbf16>
    tpu.vector_store %arg10[%c12, %c0_28], %25 {strides = array<i32>} : memref<36x1024xbf16, #tpu.memory_space<vmem>>, vector<4x1024xbf16>,
    %c4_29 = arith.constant 4 : index
    %c33_30 = arith.constant 33 : index
    %27 = vector.load %arg9[%c4_29, %c33_30] : memref<12x1090xbf16, #tpu.memory_space<vmem>>, vector<4x1024xbf16>
    %c16 = arith.constant 16 : index
    %c0_31 = arith.constant 0 : index
    %28 = vector.load %arg10[%c16, %c0_31] : memref<36x1024xbf16, #tpu.memory_space<vmem>>, vector<4x1024xbf16>
    tpu.vector_store %arg10[%c16, %c0_31], %27 {strides = array<i32>} : memref<36x1024xbf16, #tpu.memory_space<vmem>>, vector<4x1024xbf16>,
    %c8_32 = arith.constant 8 : index
    %c34 = arith.constant 34 : index
    %29 = vector.load %arg9[%c8_32, %c34] : memref<12x1090xbf16, #tpu.memory_space<vmem>>, vector<4x1024xbf16>
    %c20 = arith.constant 20 : index
    %c0_33 = arith.constant 0 : index
    %30 = vector.load %arg10[%c20, %c0_33] : memref<36x1024xbf16, #tpu.memory_space<vmem>>, vector<4x1024xbf16>
    tpu.vector_store %arg10[%c20, %c0_33], %29 {strides = array<i32>} : memref<36x1024xbf16, #tpu.memory_space<vmem>>, vector<4x1024xbf16>,
    %c0_34 = arith.constant 0 : index
    %c64 = arith.constant 64 : index
    %31 = vector.load %arg9[%c0_34, %c64] : memref<12x1090xbf16, #tpu.memory_space<vmem>>, vector<4x1024xbf16>
    %c24 = arith.constant 24 : index
    %c0_35 = arith.constant 0 : index
    %32 = vector.load %arg10[%c24, %c0_35] : memref<36x1024xbf16, #tpu.memory_space<vmem>>, vector<4x1024xbf16>
    tpu.vector_store %arg10[%c24, %c0_35], %31 {strides = array<i32>} : memref<36x1024xbf16, #tpu.memory_space<vmem>>, vector<4x1024xbf16>,
    %c4_36 = arith.constant 4 : index
    %c65 = arith.constant 65 : index
    %33 = vector.load %arg9[%c4_36, %c65] : memref<12x1090xbf16, #tpu.memory_space<vmem>>, vector<4x1024xbf16>
    %c28 = arith.constant 28 : index
    %c0_37 = arith.constant 0 : index
    %34 = vector.load %arg10[%c28, %c0_37] : memref<36x1024xbf16, #tpu.memory_space<vmem>>, vector<4x1024xbf16>
    tpu.vector_store %arg10[%c28, %c0_37], %33 {strides = array<i32>} : memref<36x1024xbf16, #tpu.memory_space<vmem>>, vector<4x1024xbf16>,
    %c8_38 = arith.constant 8 : index
    %c66 = arith.constant 66 : index
    %35 = vector.load %arg9[%c8_38, %c66] : memref<12x1090xbf16, #tpu.memory_space<vmem>>, vector<4x1024xbf16>
    %c32_39 = arith.constant 32 : index
    %c0_40 = arith.constant 0 : index
    %36 = vector.load %arg10[%c32_39, %c0_40] : memref<36x1024xbf16, #tpu.memory_space<vmem>>, vector<4x1024xbf16>
    tpu.vector_store %arg10[%c32_39, %c0_40], %35 {strides = array<i32>} : memref<36x1024xbf16, #tpu.memory_space<vmem>>, vector<4x1024xbf16>,
    %c0_41 = arith.constant 0 : index
    %c0_42 = arith.constant 0 : index
    %37 = vector.load %arg6[%c0_41, %c0_42] : memref<8x36xbf16, #tpu.memory_space<vmem>>, vector<8x36xbf16>
    %c0_43 = arith.constant 0 : index
    %c0_44 = arith.constant 0 : index
    %38 = vector.load %arg10[%c0_43, %c0_44] : memref<36x1024xbf16, #tpu.memory_space<vmem>>, vector<36x1024xbf16>
    %cst_45 = arith.constant dense<0.000000e+00> : vector<8x1024xf32>
    %39 = tpu.matmul %37, %38, %cst_45 {dimension_numbers = #tpu.dot_dimension_numbers<[1], [0], [0], [1], [0, 0, 1, 1], [], []>} : vector<8x36xbf16>, vector<36x1024xbf16>, vector<8x1024xf32> -> vector<8x1024xf32>
    %c0_46 = arith.constant 0 : index
    %c0_47 = arith.constant 0 : index
    %40 = vector.load %arg7[%c0_46, %c0_47] : memref<8x1xf32, #tpu.memory_space<vmem>>, vector<8x1xf32>
    %41 = vector.broadcast %40 : vector<8x1xf32> to vector<8x1024xf32>
    %42 = arith.addf %39, %41 : vector<8x1024xf32>
    %c0_48 = arith.constant 0 : index
    %c0_49 = arith.constant 0 : index
    %c0_50 = arith.constant 0 : index
    %43 = vector.load %arg8[%c0_48, %c0_49, %c0_50] : memref<1x8x1024xf32, #tpu.memory_space<vmem>>, vector<1x8x1024xf32>
    %44 = vector.shape_cast %43 : vector<1x8x1024xf32> to vector<8x1024xf32>
    %45 = vector.shape_cast %42 : vector<8x1024xf32> to vector<1x8x1024xf32>
    tpu.vector_store %arg8[%c0_48, %c0_49, %c0_50], %45 {strides = array<i32>} : memref<1x8x1024xf32, #tpu.memory_space<vmem>>, vector<1x8x1024xf32>,
    return
  }
  func.func @transform_0(%arg0: i32) -> (i32, i32, i32) {
    %c0_i32 = arith.constant 0 : i32
    %c0_i32_0 = arith.constant 0 : i32
    %c0_i32_1 = arith.constant 0 : i32
    return %arg0, %c0_i32, %c0_i32_0 : i32, i32, i32
  }
  func.func @transform_1(%arg0: i32) -> (i32, i32) {
    %c0_i32 = arith.constant 0 : i32
    %c0_i32_0 = arith.constant 0 : i32
    %c0_i32_1 = arith.constant 0 : i32
    return %c0_i32, %c0_i32_0 : i32, i32
  }
  func.func @transform_2(%arg0: i32) -> (i32, i32, i32) {
    %c0_i32 = arith.constant 0 : i32
    %c0_i32_0 = arith.constant 0 : i32
    %c0_i32_1 = arith.constant 0 : i32
    return %arg0, %c0_i32, %c0_i32_0 : i32, i32, i32
  }
  func.func @transform_3(%arg0: i32) -> (i32, i32) {
    %c0_i32 = arith.constant 0 : i32
    %c0_i32_0 = arith.constant 0 : i32
    %c0_i32_1 = arith.constant 0 : i32
    return %c0_i32, %c0_i32_0 : i32, i32
  }
  func.func @transform_4(%arg0: i32) -> (i32, i32) {
    %c0_i32 = arith.constant 0 : i32
    %c0_i32_0 = arith.constant 0 : i32
    %c0_i32_1 = arith.constant 0 : i32
    return %c0_i32, %c0_i32_0 : i32, i32
  }
  func.func @transform_5(%arg0: i32) -> (i32, i32) {
    %c0_i32 = arith.constant 0 : i32
    %c0_i32_0 = arith.constant 0 : i32
    %c0_i32_1 = arith.constant 0 : i32
    return %c0_i32, %c0_i32_0 : i32, i32
  }
  func.func @transform_6(%arg0: i32) -> (i32, i32) {
    %c0_i32 = arith.constant 0 : i32
    %c0_i32_0 = arith.constant 0 : i32
    %c0_i32_1 = arith.constant 0 : i32
    return %c0_i32, %c0_i32_0 : i32, i32
  }
  func.func @transform_7(%arg0: i32) -> (i32, i32, i32) {
    %c0_i32 = arith.constant 0 : i32
    %c0_i32_0 = arith.constant 0 : i32
    %c0_i32_1 = arith.constant 0 : i32
    return %arg0, %c0_i32, %c0_i32_0 : i32, i32, i32
  }
}

</mosaic_0001>

<bundles_post_ra>
// kernel: upsample_block.1
= control target key start
LH: loop header
LB: loop body
LE: loop exit
PB: predicated region body
PF: predicated region fallthrough
CT: control target
= control target key end

     0   :  { %s2047_s24 = smov 0   ;;  %s3240_s0 = inlined_call_operand.vmem [shape: f32[2,4,256], index: 0, kind: input, shape index: {}]   ;;  %s3241_s1 = inlined_call_operand.vmem [shape: f32[256,1024], index: 1, kind: input, shape index: {}]   ;;  %s3242_s2 = inlined_call_operand.vmem [shape: f32[2,4,1024], index: 2, kind: input, shape index: {}]   ;;  %s3243_s3 = inlined_call_operand.vmem [shape: bf16[1,1024], index: 3, kind: input, shape index: {}]   ;;  %s3244_s4 = inlined_call_operand.vmem [shape: bf16[1,1024], index: 4, kind: input, shape index: {}]   ;;  %s3245_s5 = inlined_call_operand.vmem [shape: bf16[8,36], index: 5, kind: input, shape index: {}]   ;;  %s3246_s6 = inlined_call_operand.vmem [shape: f32[8,1], index: 6, kind: input, shape index: {}]   ;;  %s3247_s7 = inlined_call_operand.vmem [shape: f32[2,8,1024], index: 7, kind: output, shape index: {}]  }
   0x1 LB: > { %s1860_s25 = sadd.s32 4294967295, %s1995_s24   ;;  %p1864_p0 = scmp.ge.s32.totalorder %s1995_s24, 1  ;;  %s1995_s24 = sphi %s2047_s24, %s17_s24  }
   0x2   : > { %p247_p1 = scmp.lt.s32.totalorder %s1995_s24, 3 }
   0x4   : > { %p248_p2 = pnand %p1864_p0, %p247_p1 }
   0x5   : > { %p2096_p3 = scmp.lt.s32.totalorder (!%p248_p2), %s1860_s25, 1  ;;  %s1999_s29 = smov (!%p248_p2), 63  }
   0x6   : > { %251 = sbr.rel (%p248_p2) target bundleno = 720 (0x2d0), region = 48  ;;  %s2000_s30 = smov (!%p248_p2), 126  }
   0x7   : > { %s2001_s9 = smov (!%p248_p2), 127   ;;  %s2002_s10 = smov (!%p248_p2), 94  }
   0x8   : > { %s2004_s8 = smov (!%p248_p2), 95   ;;  %s2005_s11 = smov (!%p248_p2), 96  }
   0x9   : > { %s2006_s12 = smov (!%p248_p2), 62  }
   0xb   : > { %v422_v0 = vld [vmem:[%s3241_s1 + $0x3c8] sm:$0xff]  ;;  %v421_v4 = vld [vmem:[%s3241_s1 + $0x3c0] sm:$0xff]  ;;  %s3252_s25 = smov (!%p2096_p3, %s1860_s25), 1  ;;  %vm1064_vm0 = vcmask 1043722   ;;  %vm1065_vm1 = vcmask 1047558   ;;  %vm1009_vm2 = vcmask 269312  }
   0xc   : > { %v414_v1 = vld [vmem:[%s3241_s1 + $0x388] sm:$0xff]  ;;  %634 = vmatpush.msra.mxu2 %v422_v0  ;;  %594 = vmatpush.msra.mxu0 %v421_v4  ;;  %v413_v7 = vld [vmem:[%s3241_s1 + $0x380] sm:$0xff]  ;;  %s1950_s20 = sshll.u32 %s3252_s25, 3  ;;  %v424_v0 = vld [vmem:[%s3241_s1 + $0x3d8] sm:$0xff]  ;;  %s1951_s28 = sshll.u32 %s3252_s25, 5  ;;  %vm1023_vm4 = vcmask 1041672  }
   0xd   : > { %v550_v2 = vld [vmem:[%s3241_s1 + $0x7c8] sm:$0xff]  ;;  %v549_v9 = vld [vmem:[%s3241_s1 + $0x7c0] sm:$0xff]  ;;  %s288_s14 = scalar_lea.vmem %s3240_s0, %s1950_s20  ;;  %v416_v4 = vld [vmem:[%s3241_s1 + $0x398] sm:$0xff]  ;;  %s2699_s18 = scalar_lea.vmem %s3242_s2, %s1951_s28  ;;  %vm1024_vm5 = vcmask 1045508   ;;  %vm1011_vm7 = vcmask 1043456   ;;  %vm922_vm8 = vcmask 535552  }
   0xe   : > { %654 = vmatpush.msra.mxu3 %v550_v2  ;;  %v542_v3 = vld [vmem:[%s3241_s1 + $0x788] sm:$0xff]  ;;  %635 = vmatpush.msra.mxu2 %v414_v1  ;;  %v405_v11 = vld [vmem:[%s3241_s1 + $0x340] sm:$0xff]  ;;  %v552_v1 = vld [vmem:[%s3241_s1 + $0x7d8] sm:$0xff]  ;;  %s1997_s28 = smov 33   ;;  %vm928_vm9 = vcmask 533504   ;;  %vm1030_vm10 = vcmask 263168  }
   0xf   : > { %v406_v5 = vld [vmem:[%s3241_s1 + $0x348] sm:$0xff]  ;;  %595 = vmatpush.msra.mxu0 %v413_v7  ;;  %614 = vmatpush.msra.mxu1 %v549_v9  ;;  %v541_v12 = vld [vmem:[%s3241_s1 + $0x780] sm:$0xff]  ;;  %v408_v7 = vld [vmem:[%s3241_s1 + $0x358] sm:$0xff]  ;;  %vm1071_vm11 = vcmask 265218   ;;  %vm1195_vm12 = vcmask 1039360   ;;  %vm1383_vm13 = vcmask 769024  }
  0x10   : > { %v534_v6 = vld [vmem:[%s3241_s1 + $0x748] sm:$0xff]  ;;  %655 = vmatpush.msra.mxu3 %v542_v3  ;;  %636 = vmatpush.msra.mxu2 %v406_v5  ;;  %v397_v13 = vld [vmem:[%s3241_s1 + $0x300] sm:$0xff]  ;;  %v544_v5 = vld [vmem:[%s3241_s1 + $0x798] sm:$0xff]  ;;  %vm1467_vm14 = vcmask 515072   ;;  %vm1336_vm15 = vcmask 777216   ;;  %s1952_s17 = sshll.u32 %s3252_s25, 6 }
  0x11   : > { %v398_v8 = vld [vmem:[%s3241_s1 + $0x308] sm:$0xff]  ;;  %v533_v14 = vld [vmem:[%s3241_s1 + $0x740] sm:$0xff]  ;;  %596 = vmatpush.msra.mxu0 %v405_v11  ;;  %615 = vmatpush.msra.mxu1 %v541_v12  ;;  %v536_v9 = vld [vmem:[%s3241_s1 + $0x758] sm:$0xff]  ;;  %s298_s22 = scalar_lea.vmem %s3247_s7, %s1952_s17 }
  0x12   : > { %v526_v10 = vld [vmem:[%s3241_s1 + $0x708] sm:$0xff]  ;;  %656 = vmatpush.msra.mxu3 %v534_v6  ;;  %637 = vmatpush.msra.mxu2 %v398_v8  ;;  %v389_v17 = vld [vmem:[%s3241_s1 + $0x2c0] sm:$0xff]  ;;  %v423_v8 = vld [vmem:[%s3241_s1 + $0x3d0] sm:$0xff] }
  0x13   : > { %v390_v15 = vld [vmem:[%s3241_s1 + $0x2c8] sm:$0xff]  ;;  %v525_v18 = vld [vmem:[%s3241_s1 + $0x700] sm:$0xff]  ;;  %597 = vmatpush.msra.mxu0 %v397_v13  ;;  %616 = vmatpush.msra.mxu1 %v533_v14  ;;  %v415_v11 = vld [vmem:[%s3241_s1 + $0x390] sm:$0xff] }
  0x14   : > { %v518_v16 = vld [vmem:[%s3241_s1 + $0x6c8] sm:$0xff]  ;;  %657 = vmatpush.msra.mxu3 %v526_v10  ;;  %638 = vmatpush.msra.mxu2 %v390_v15  ;;  %v381_v21 = vld [vmem:[%s3241_s1 + $0x280] sm:$0xff]  ;;  %v400_v10 = vld [vmem:[%s3241_s1 + $0x318] sm:$0xff] }
  0x15   : > { %v382_v19 = vld [vmem:[%s3241_s1 + $0x288] sm:$0xff]  ;;  %v517_v22 = vld [vmem:[%s3241_s1 + $0x6c0] sm:$0xff]  ;;  %598 = vmatpush.msra.mxu0 %v389_v17  ;;  %617 = vmatpush.msra.mxu1 %v525_v18  ;;  %v551_v12 = vld [vmem:[%s3241_s1 + $0x7d0] sm:$0xff] }
  0x16   : > { %v510_v20 = vld [vmem:[%s3241_s1 + $0x688] sm:$0xff]  ;;  %658 = vmatpush.msra.mxu3 %v518_v16  ;;  %639 = vmatpush.msra.mxu2 %v382_v19  ;;  %v373_v25 = vld [vmem:[%s3241_s1 + $0x240] sm:$0xff]  ;;  %v528_v13 = vld [vmem:[%s3241_s1 + $0x718] sm:$0xff] }
  0x17   : > { %v374_v23 = vld [vmem:[%s3241_s1 + $0x248] sm:$0xff]  ;;  %v509_v26 = vld [vmem:[%s3241_s1 + $0x680] sm:$0xff]  ;;  %599 = vmatpush.msra.mxu0 %v381_v21  ;;  %618 = vmatpush.msra.mxu1 %v517_v22  ;;  %v392_v14 = vld [vmem:[%s3241_s1 + $0x2d8] sm:$0xff] }
  0x18   : > { %v502_v24 = vld [vmem:[%s3241_s1 + $0x648] sm:$0xff]  ;;  %659 = vmatpush.msra.mxu3 %v510_v20  ;;  %640 = vmatpush.msra.mxu2 %v374_v23  ;;  %v365_v29 = vld [vmem:[%s3241_s1 + $0x200] sm:$0xff]  ;;  %v407_v15 = vld [vmem:[%s3241_s1 + $0x350] sm:$0xff] }
  0x19   : > { %v366_v27 = vld [vmem:[%s3241_s1 + $0x208] sm:$0xff]  ;;  %v501_v30 = vld [vmem:[%s3241_s1 + $0x640] sm:$0xff]  ;;  %600 = vmatpush.msra.mxu0 %v373_v25  ;;  %619 = vmatpush.msra.mxu1 %v509_v26  ;;  %v543_v16 = vld [vmem:[%s3241_s1 + $0x790] sm:$0xff] }
  0x1a   : > { %v494_v28 = vld [vmem:[%s3241_s1 + $0x608] sm:$0xff]  ;;  %660 = vmatpush.msra.mxu3 %v502_v24  ;;  %641 = vmatpush.msra.mxu2 %v366_v27  ;;  %v357_v33 = vld [vmem:[%s3241_s1 + $0x1c0] sm:$0xff]  ;;  %v520_v17 = vld [vmem:[%s3241_s1 + $0x6d8] sm:$0xff] }
  0x1b   : > { %v358_v31 = vld [vmem:[%s3241_s1 + $0x1c8] sm:$0xff]  ;;  %v493_v34 = vld [vmem:[%s3241_s1 + $0x600] sm:$0xff]  ;;  %601 = vmatpush.msra.mxu0 %v365_v29  ;;  %620 = vmatpush.msra.mxu1 %v501_v30  ;;  %v384_v18 = vld [vmem:[%s3241_s1 + $0x298] sm:$0xff] }
  0x1c   : > { %v486_v32 = vld [vmem:[%s3241_s1 + $0x5c8] sm:$0xff]  ;;  %661 = vmatpush.msra.mxu3 %v494_v28  ;;  %642 = vmatpush.msra.mxu2 %v358_v31  ;;  %v349_v37 = vld [vmem:[%s3241_s1 + $0x180] sm:$0xff]  ;;  %v399_v19 = vld [vmem:[%s3241_s1 + $0x310] sm:$0xff] }
  0x1d   : > { %v350_v35 = vld [vmem:[%s3241_s1 + $0x188] sm:$0xff]  ;;  %v485_v38 = vld [vmem:[%s3241_s1 + $0x5c0] sm:$0xff]  ;;  %602 = vmatpush.msra.mxu0 %v357_v33  ;;  %621 = vmatpush.msra.mxu1 %v493_v34  ;;  %v535_v20 = vld [vmem:[%s3241_s1 + $0x750] sm:$0xff] }
  0x1e   : > { %v478_v36 = vld [vmem:[%s3241_s1 + $0x588] sm:$0xff]  ;;  %662 = vmatpush.msra.mxu3 %v486_v32  ;;  %v300_v41 = vld [vmem:[%s288_s14] sm:$0xff]  ;;  %643 = vmatpush.msra.mxu2 %v350_v35  ;;  %v512_v21 = vld [vmem:[%s3241_s1 + $0x698] sm:$0xff] }
  0x1f   : > { %v342_v39 = vld [vmem:[%s3241_s1 + $0x148] sm:$0xff]  ;;  %v341_v42 = vld [vmem:[%s3241_s1 + $0x140] sm:$0xff]  ;;  %562 = vst [vmem:[#allocation1] ss:$2 sm:$0xff] %v300_v41  ;;  %603 = vmatpush.msra.mxu0 %v349_v37  ;;  %622 = vmatpush.msra.mxu1 %v485_v38  ;;  %v376_v22 = vld [vmem:[%s3241_s1 + $0x258] sm:$0xff] }
  0x20   : > { %v470_v40 = vld [vmem:[%s3241_s1 + $0x548] sm:$0xff]  ;;  %663 = vmatpush.msra.mxu3 %v478_v36  ;;  %v477_v43 = vld [vmem:[%s3241_s1 + $0x580] sm:$0xff]  ;;  %644 = vmatpush.msra.mxu2 %v342_v39  ;;  %v391_v23 = vld [vmem:[%s3241_s1 + $0x2d0] sm:$0xff] }
  0x21   : > { %v334_v44 = vld [vmem:[%s3241_s1 + $0x108] sm:$0xff]  ;;  %v333_v46 = vld [vmem:[%s3241_s1 + $0x100] sm:$0xff]  ;;  %604 = vmatpush.msra.mxu0 %v341_v42  ;;  %623 = vmatpush.msra.mxu1 %v477_v43  ;;  %v527_v24 = vld [vmem:[%s3241_s1 + $0x710] sm:$0xff] }
  0x22   : > { %v462_v45 = vld [vmem:[%s3241_s1 + $0x508] sm:$0xff]  ;;  %664 = vmatpush.msra.mxu3 %v470_v40  ;;  %v469_v47 = vld [vmem:[%s3241_s1 + $0x540] sm:$0xff]  ;;  %645 = vmatpush.msra.mxu2 %v334_v44  ;;  %v504_v25 = vld [vmem:[%s3241_s1 + $0x658] sm:$0xff] }
  0x23   : > { %v326_v48 = vld [vmem:[%s3241_s1 + $0xc8] sm:$0xff]  ;;  %v325_v50 = vld [vmem:[%s3241_s1 + $0xc0] sm:$0xff]  ;;  %605 = vmatpush.msra.mxu0 %v333_v46  ;;  %624 = vmatpush.msra.mxu1 %v469_v47  ;;  %v368_v26 = vld [vmem:[%s3241_s1 + $0x218] sm:$0xff] }
  0x24   : > { %v454_v49 = vld [vmem:[%s3241_s1 + $0x4c8] sm:$0xff]  ;;  %665 = vmatpush.msra.mxu3 %v462_v45  ;;  %v461_v51 = vld [vmem:[%s3241_s1 + $0x500] sm:$0xff]  ;;  %646 = vmatpush.msra.mxu2 %v326_v48  ;;  %v383_v27 = vld [vmem:[%s3241_s1 + $0x290] sm:$0xff] }
  0x25   : > { %v318_v52 = vld [vmem:[%s3241_s1 + $0x88] sm:$0xff]  ;;  %v317_v54 = vld [vmem:[%s3241_s1 + $0x80] sm:$0xff]  ;;  %606 = vmatpush.msra.mxu0 %v325_v50  ;;  %625 = vmatpush.msra.mxu1 %v461_v51  ;;  %v519_v28 = vld [vmem:[%s3241_s1 + $0x6d0] sm:$0xff] }
  0x26   : > { %v446_v53 = vld [vmem:[%s3241_s1 + $0x488] sm:$0xff]  ;;  %666 = vmatpush.msra.mxu3 %v454_v49  ;;  %v453_v55 = vld [vmem:[%s3241_s1 + $0x4c0] sm:$0xff]  ;;  %647 = vmatpush.msra.mxu2 %v318_v52  ;;  %v496_v29 = vld [vmem:[%s3241_s1 + $0x618] sm:$0xff] }
  0x27   : > { %v310_v56 = vld [vmem:[%s3241_s1 + $0x48] sm:$0xff]  ;;  %v309_v58 = vld [vmem:[%s3241_s1 + $0x40] sm:$0xff]  ;;  %607 = vmatpush.msra.mxu0 %v317_v54  ;;  %626 = vmatpush.msra.mxu1 %v453_v55  ;;  %v360_v30 = vld [vmem:[%s3241_s1 + $0x1d8] sm:$0xff] }
  0x28   : > { %v438_v57 = vld [vmem:[%s3241_s1 + $0x448] sm:$0xff]  ;;  %667 = vmatpush.msra.mxu3 %v446_v53  ;;  %v445_v59 = vld [vmem:[%s3241_s1 + $0x480] sm:$0xff]  ;;  %648 = vmatpush.msra.mxu2 %v310_v56  ;;  %v375_v31 = vld [vmem:[%s3241_s1 + $0x250] sm:$0xff] }
  0x29   : > { %v302_v60 = vld [vmem:[%s3241_s1 + $0x8] sm:$0xff]  ;;  %v2254_v62 = vld.sshfl [vmem:[#allocation1] sm:$0xff pattern:$0x75316420]  ;;  %608 = vmatpush.msra.mxu0 %v309_v58  ;;  %627 = vmatpush.msra.mxu1 %v445_v59  ;;  %v511_v32 = vld [vmem:[%s3241_s1 + $0x690] sm:$0xff] }
  0x2a   : > { %v430_v61 = vld [vmem:[%s3241_s1 + $0x408] sm:$0xff]  ;;  %668 = vmatpush.msra.mxu3 %v438_v57  ;;  %649 = vmatpush.msra.mxu2 %v302_v60  ;;  %v301_v2 = vld [vmem:[%s3241_s1] sm:$0xff]  ;;  %v488_v33 = vld [vmem:[%s3241_s1 + $0x5d8] sm:$0xff] }
  0x2b   : > { %v2256_v63 = vld.sshfl [vmem:[#allocation1 + $0x8] sm:$0xff pattern:$0x75316420]  ;;  %v437_v3 = vld [vmem:[%s3241_s1 + $0x440] sm:$0xff]  ;;  %650 = vmatmul.f32.vlgmr.msra.gmra.mxu2 %v2254_v62  ;;  %609 = vmatpush.msra.mxu0 %v301_v2  ;;  %v352_v34 = vld [vmem:[%s3241_s1 + $0x198] sm:$0xff] }
  0x2c   : > { %669 = vmatpush.msra.mxu3 %v430_v61  ;;  %714 = vmatpush.msrb.mxu2 %v424_v0  ;;  %v429_v6 = vld [vmem:[%s3241_s1 + $0x400] sm:$0xff]  ;;  %v367_v35 = vld [vmem:[%s3241_s1 + $0x210] sm:$0xff]  ;;  %v480_v37 = vld [vmem:[%s3241_s1 + $0x598] sm:$0xff] }
  0x2d   : > { %670 = vmatmul.f32.vlgmr.msra.gmra.mxu3 %v2256_v63  ;;  %628 = vmatpush.msra.mxu1 %v437_v3  ;;  %v503_v36 = vld [vmem:[%s3241_s1 + $0x650] sm:$0xff]  ;;  %v344_v38 = vld [vmem:[%s3241_s1 + $0x158] sm:$0xff]  ;;  %v426_v61 = vld [vmem:[%s3241_s1 + $0x3e8] sm:$0xff] }
  0x2e   : > { %734 = vmatpush.msrb.mxu3 %v552_v1  ;;  %715 = vmatpush.msrb.mxu2 %v416_v4  ;;  %v359_v39 = vld [vmem:[%s3241_s1 + $0x1d0] sm:$0xff]  ;;  %v472_v41 = vld [vmem:[%s3241_s1 + $0x558] sm:$0xff]  ;;  %v418_v2 = vld [vmem:[%s3241_s1 + $0x3a8] sm:$0xff] }
  0x2f   : > { %610 = vmatmul.f32.vlgmr.msra.gmra.mxu0 %v2254_v62  ;;  %629 = vmatpush.msra.mxu1 %v429_v6  ;;  %v495_v40 = vld [vmem:[%s3241_s1 + $0x610] sm:$0xff]  ;;  %v336_v42 = vld [vmem:[%s3241_s1 + $0x118] sm:$0xff]  ;;  %v554_v3 = vld [vmem:[%s3241_s1 + $0x7e8] sm:$0xff] }
  0x30   : > { %735 = vmatpush.msrb.mxu3 %v544_v5  ;;  %716 = vmatpush.msrb.mxu2 %v408_v7  ;;  %v351_v43 = vld [vmem:[%s3241_s1 + $0x190] sm:$0xff]  ;;  %v464_v45 = vld [vmem:[%s3241_s1 + $0x518] sm:$0xff]  ;;  %v410_v6 = vld [vmem:[%s3241_s1 + $0x368] sm:$0xff] }
  0x31   : > { %674 = vmatpush.msrb.mxu0 %v423_v8  ;;  %630 = vmatmul.f32.vlgmr.msra.gmra.mxu1 %v2256_v63  ;;  %v487_v44 = vld [vmem:[%s3241_s1 + $0x5d0] sm:$0xff]  ;;  %v328_v46 = vld [vmem:[%s3241_s1 + $0xd8] sm:$0xff]  ;;  %v546_v7 = vld [vmem:[%s3241_s1 + $0x7a8] sm:$0xff] }
  0x32   : > { %736 = vmatpush.msrb.mxu3 %v536_v9  ;;  %717 = vmatpush.msrb.mxu2 %v400_v10  ;;  %v343_v47 = vld [vmem:[%s3241_s1 + $0x150] sm:$0xff]  ;;  %v456_v49 = vld [vmem:[%s3241_s1 + $0x4d8] sm:$0xff]  ;;  %v425_v9 = vld [vmem:[%s3241_s1 + $0x3e0] sm:$0xff] }
  0x33   : > { %675 = vmatpush.msrb.mxu0 %v415_v11  ;;  %694 = vmatpush.msrb.mxu1 %v551_v12  ;;  %v479_v48 = vld [vmem:[%s3241_s1 + $0x590] sm:$0xff]  ;;  %v320_v50 = vld [vmem:[%s3241_s1 + $0x98] sm:$0xff]  ;;  %v402_v10 = vld [vmem:[%s3241_s1 + $0x328] sm:$0xff] }
  0x34   : > { %737 = vmatpush.msrb.mxu3 %v528_v13  ;;  %718 = vmatpush.msrb.mxu2 %v392_v14  ;;  %v335_v51 = vld [vmem:[%s3241_s1 + $0x110] sm:$0xff]  ;;  %v448_v53 = vld [vmem:[%s3241_s1 + $0x498] sm:$0xff]  ;;  %v538_v11 = vld [vmem:[%s3241_s1 + $0x768] sm:$0xff] }
  0x35   : > { %676 = vmatpush.msrb.mxu0 %v407_v15  ;;  %695 = vmatpush.msrb.mxu1 %v543_v16  ;;  %v471_v52 = vld [vmem:[%s3241_s1 + $0x550] sm:$0xff]  ;;  %v312_v54 = vld [vmem:[%s3241_s1 + $0x58] sm:$0xff]  ;;  %v417_v13 = vld [vmem:[%s3241_s1 + $0x3a0] sm:$0xff] }
  0x36   : > { %738 = vmatpush.msrb.mxu3 %v520_v17  ;;  %719 = vmatpush.msrb.mxu2 %v384_v18  ;;  %v327_v55 = vld [vmem:[%s3241_s1 + $0xd0] sm:$0xff]  ;;  %v440_v57 = vld [vmem:[%s3241_s1 + $0x458] sm:$0xff]  ;;  %v553_v14 = vld [vmem:[%s3241_s1 + $0x7e0] sm:$0xff] }
  0x37   : > { %677 = vmatpush.msrb.mxu0 %v399_v19  ;;  %696 = vmatpush.msrb.mxu1 %v535_v20  ;;  %v463_v56 = vld [vmem:[%s3241_s1 + $0x510] sm:$0xff]  ;;  %v304_v58 = vld [vmem:[%s3241_s1 + $0x18] sm:$0xff]  ;;  %v394_v15 = vld [vmem:[%s3241_s1 + $0x2e8] sm:$0xff] }
  0x38   : > { %739 = vmatpush.msrb.mxu3 %v512_v21  ;;  %720 = vmatpush.msrb.mxu2 %v376_v22  ;;  %v319_v59 = vld [vmem:[%s3241_s1 + $0x90] sm:$0xff]  ;;  %v432_v0 = vld [vmem:[%s3241_s1 + $0x418] sm:$0xff]  ;;  %v530_v16 = vld [vmem:[%s3241_s1 + $0x728] sm:$0xff] }
  0x39   : > { %678 = vmatpush.msrb.mxu0 %v391_v23  ;;  %697 = vmatpush.msrb.mxu1 %v527_v24  ;;  %v455_v60 = vld [vmem:[%s3241_s1 + $0x4d0] sm:$0xff]  ;;  %v409_v17 = vld [vmem:[%s3241_s1 + $0x360] sm:$0xff]  ;;  %v386_v19 = vld [vmem:[%s3241_s1 + $0x2a8] sm:$0xff] }
  0x3a   : > { %740 = vmatpush.msrb.mxu3 %v504_v25  ;;  %721 = vmatpush.msrb.mxu2 %v368_v26  ;;  %v311_v1 = vld [vmem:[%s3241_s1 + $0x50] sm:$0xff]  ;;  %v545_v18 = vld [vmem:[%s3241_s1 + $0x7a0] sm:$0xff]  ;;  %v522_v20 = vld [vmem:[%s3241_s1 + $0x6e8] sm:$0xff] }
  0x3b   : > { %679 = vmatpush.msrb.mxu0 %v383_v27  ;;  %698 = vmatpush.msrb.mxu1 %v519_v28  ;;  %v447_v4 = vld [vmem:[%s3241_s1 + $0x490] sm:$0xff]  ;;  %v401_v21 = vld [vmem:[%s3241_s1 + $0x320] sm:$0xff]  ;;  %v378_v23 = vld [vmem:[%s3241_s1 + $0x268] sm:$0xff] }
  0x3c   : > { %741 = vmatpush.msrb.mxu3 %v496_v29  ;;  %722 = vmatpush.msrb.mxu2 %v360_v30  ;;  %v303_v5 = vld [vmem:[%s3241_s1 + $0x10] sm:$0xff]  ;;  %v537_v22 = vld [vmem:[%s3241_s1 + $0x760] sm:$0xff]  ;;  %v514_v24 = vld [vmem:[%s3241_s1 + $0x6a8] sm:$0xff] }
  0x3d   : > { %680 = vmatpush.msrb.mxu0 %v375_v31  ;;  %699 = vmatpush.msrb.mxu1 %v511_v32  ;;  %v439_v8 = vld [vmem:[%s3241_s1 + $0x450] sm:$0xff]  ;;  %v393_v25 = vld [vmem:[%s3241_s1 + $0x2e0] sm:$0xff]  ;;  %v370_v27 = vld [vmem:[%s3241_s1 + $0x228] sm:$0xff] }
  0x3e   : > { %742 = vmatpush.msrb.mxu3 %v488_v33  ;;  %723 = vmatpush.msrb.mxu2 %v352_v34  ;;  %v431_v12 = vld [vmem:[%s3241_s1 + $0x410] sm:$0xff]  ;;  %v529_v26 = vld [vmem:[%s3241_s1 + $0x720] sm:$0xff]  ;;  %v506_v28 = vld [vmem:[%s3241_s1 + $0x668] sm:$0xff] }
  0x3f   : > { %681 = vmatpush.msrb.mxu0 %v367_v35  ;;  %700 = vmatpush.msrb.mxu1 %v503_v36  ;;  %v385_v29 = vld [vmem:[%s3241_s1 + $0x2a0] sm:$0xff]  ;;  %v362_v31 = vld [vmem:[%s3241_s1 + $0x1e8] sm:$0xff]  ;;  %vm1066_vm3 = vmor %vm1065_vm1, %vm1064_vm0  ;;  %vm1425_vm0 = vcmask 523264   ;;  %vm1509_vm1 = vcmask 506880  }
  0x40   : > { %743 = vmatpush.msrb.mxu3 %v480_v37  ;;  %724 = vmatpush.msrb.mxu2 %v344_v38  ;;  %v521_v30 = vld [vmem:[%s3241_s1 + $0x6e0] sm:$0xff]  ;;  %v498_v32 = vld [vmem:[%s3241_s1 + $0x628] sm:$0xff]  ;;  %vm2938_vm6 = vmor %vm1024_vm5, %vm1023_vm4  ;;  %vm1656_vm4 = vcmask 1041408   ;;  %vm1652_vm5 = vcmask 293888  }
  0x41   : > { %682 = vmatpush.msrb.mxu0 %v359_v39  ;;  %701 = vmatpush.msrb.mxu1 %v495_v40  ;;  %v377_v33 = vld [vmem:[%s3241_s1 + $0x260] sm:$0xff]  ;;  %v354_v35 = vld [vmem:[%s3241_s1 + $0x1a8] sm:$0xff] }
  0x42   : > { %744 = vmatpush.msrb.mxu3 %v472_v41  ;;  %725 = vmatpush.msrb.mxu2 %v336_v42  ;;  %v513_v34 = vld [vmem:[%s3241_s1 + $0x6a0] sm:$0xff]  ;;  %v490_v36 = vld [vmem:[%s3241_s1 + $0x5e8] sm:$0xff] }
  0x43   : > { %683 = vmatpush.msrb.mxu0 %v351_v43  ;;  %702 = vmatpush.msrb.mxu1 %v487_v44  ;;  %v369_v37 = vld [vmem:[%s3241_s1 + $0x220] sm:$0xff]  ;;  %v346_v39 = vld [vmem:[%s3241_s1 + $0x168] sm:$0xff] }
  0x44   : > { %745 = vmatpush.msrb.mxu3 %v464_v45  ;;  %726 = vmatpush.msrb.mxu2 %v328_v46  ;;  %v505_v38 = vld [vmem:[%s3241_s1 + $0x660] sm:$0xff]  ;;  %v482_v40 = vld [vmem:[%s3241_s1 + $0x5a8] sm:$0xff] }
  0x45   : > { %684 = vmatpush.msrb.mxu0 %v343_v47  ;;  %703 = vmatpush.msrb.mxu1 %v479_v48  ;;  %v361_v41 = vld [vmem:[%s3241_s1 + $0x1e0] sm:$0xff]  ;;  %v338_v43 = vld [vmem:[%s3241_s1 + $0x128] sm:$0xff] }
  0x46   : > { %746 = vmatpush.msrb.mxu3 %v456_v49  ;;  %727 = vmatpush.msrb.mxu2 %v320_v50  ;;  %v497_v42 = vld [vmem:[%s3241_s1 + $0x620] sm:$0xff]  ;;  %v474_v44 = vld [vmem:[%s3241_s1 + $0x568] sm:$0xff] }
  0x47   : > { %685 = vmatpush.msrb.mxu0 %v335_v51  ;;  %704 = vmatpush.msrb.mxu1 %v471_v52  ;;  %v353_v45 = vld [vmem:[%s3241_s1 + $0x1a0] sm:$0xff]  ;;  %v330_v47 = vld [vmem:[%s3241_s1 + $0xe8] sm:$0xff] }
  0x48   : > { %747 = vmatpush.msrb.mxu3 %v448_v53  ;;  %728 = vmatpush.msrb.mxu2 %v312_v54  ;;  %v489_v46 = vld [vmem:[%s3241_s1 + $0x5e0] sm:$0xff]  ;;  %v466_v48 = vld [vmem:[%s3241_s1 + $0x528] sm:$0xff] }
  0x49   : > { %686 = vmatpush.msrb.mxu0 %v327_v55  ;;  %705 = vmatpush.msrb.mxu1 %v463_v56  ;;  %v345_v49 = vld [vmem:[%s3241_s1 + $0x160] sm:$0xff]  ;;  %v322_v51 = vld [vmem:[%s3241_s1 + $0xa8] sm:$0xff] }
  0x4a   : > { %748 = vmatpush.msrb.mxu3 %v440_v57  ;;  %729 = vmatpush.msrb.mxu2 %v304_v58  ;;  %v481_v50 = vld [vmem:[%s3241_s1 + $0x5a0] sm:$0xff]  ;;  %v458_v52 = vld [vmem:[%s3241_s1 + $0x4e8] sm:$0xff] }
  0x4b   : > { %687 = vmatpush.msrb.mxu0 %v319_v59  ;;  %730 = vmatmul.f32.vlgmr.msrb.gmra.mxu2 %v2254_v62  ;;  %v337_v53 = vld [vmem:[%s3241_s1 + $0x120] sm:$0xff]  ;;  %v314_v55 = vld [vmem:[%s3241_s1 + $0x68] sm:$0xff] }
  0x4c   : > { %706 = vmatpush.msrb.mxu1 %v455_v60  ;;  %794 = vmatpush.msra.mxu2 %v426_v61  ;;  %v473_v54 = vld [vmem:[%s3241_s1 + $0x560] sm:$0xff]  ;;  %v450_v56 = vld [vmem:[%s3241_s1 + $0x4a8] sm:$0xff]  ;;  %v428_v61 = vld [vmem:[%s3241_s1 + $0x3f8] sm:$0xff] }
  0x4d   : > { %749 = vmatpush.msrb.mxu3 %v432_v0  ;;  %688 = vmatpush.msrb.mxu0 %v311_v1  ;;  %v329_v57 = vld [vmem:[%s3241_s1 + $0xe0] sm:$0xff]  ;;  %v306_v59 = vld [vmem:[%s3241_s1 + $0x28] sm:$0xff] }
  0x4e   : > { %750 = vmatmul.f32.vlgmr.msrb.gmra.mxu3 %v2256_v63  ;;  %795 = vmatpush.msra.mxu2 %v418_v2  ;;  %v465_v58 = vld [vmem:[%s3241_s1 + $0x520] sm:$0xff]  ;;  %v442_v60 = vld [vmem:[%s3241_s1 + $0x468] sm:$0xff] }
  0x4f   : > { %814 = vmatpush.msra.mxu3 %v554_v3  ;;  %707 = vmatpush.msrb.mxu1 %v447_v4  ;;  %v321_v0 = vld [vmem:[%s3241_s1 + $0xa0] sm:$0xff]  ;;  %v434_v2 = vld [vmem:[%s3241_s1 + $0x428] sm:$0xff]  ;;  %v420_v3 = vld [vmem:[%s3241_s1 + $0x3b8] sm:$0xff] }
  0x50   : > { %689 = vmatpush.msrb.mxu0 %v303_v5  ;;  %796 = vmatpush.msra.mxu2 %v410_v6  ;;  %v457_v1 = vld [vmem:[%s3241_s1 + $0x4e0] sm:$0xff]  ;;  %v556_v4 = vld [vmem:[%s3241_s1 + $0x7f8] sm:$0xff] }
  0x51   : > { %815 = vmatpush.msra.mxu3 %v546_v7  ;;  %708 = vmatpush.msrb.mxu1 %v439_v8  ;;  %v313_v5 = vld [vmem:[%s3241_s1 + $0x60] sm:$0xff]  ;;  %v412_v7 = vld [vmem:[%s3241_s1 + $0x378] sm:$0xff] }
  0x52   : > { %690 = vmatmul.f32.vlgmr.msrb.gmra.mxu0 %v2254_v62  ;;  %797 = vmatpush.msra.mxu2 %v402_v10  ;;  %v449_v6 = vld [vmem:[%s3241_s1 + $0x4a0] sm:$0xff]  ;;  %v548_v8 = vld [vmem:[%s3241_s1 + $0x7b8] sm:$0xff] }
  0x53   : > { %754 = vmatpush.msra.mxu0 %v425_v9  ;;  %816 = vmatpush.msra.mxu3 %v538_v11  ;;  %v305_v9 = vld [vmem:[%s3241_s1 + $0x20] sm:$0xff]  ;;  %v427_v11 = vld [vmem:[%s3241_s1 + $0x3f0] sm:$0xff] }
  0x54   : > { %709 = vmatpush.msrb.mxu1 %v431_v12  ;;  %798 = vmatpush.msra.mxu2 %v394_v15  ;;  %v441_v10 = vld [vmem:[%s3241_s1 + $0x460] sm:$0xff]  ;;  %v404_v12 = vld [vmem:[%s3241_s1 + $0x338] sm:$0xff]  ;;  %v419_v15 = vld [vmem:[%s3241_s1 + $0x3b0] sm:$0xff] }
  0x55   : > { %710 = vmatmul.f32.vlgmr.msrb.gmra.mxu1 %v2256_v63  ;;  %755 = vmatpush.msra.mxu0 %v417_v13  ;;  %v540_v13 = vld [vmem:[%s3241_s1 + $0x778] sm:$0xff] }
  0x56   : > { %774 = vmatpush.msra.mxu1 %v553_v14  ;;  %817 = vmatpush.msra.mxu3 %v530_v16  ;;  %v433_v14 = vld [vmem:[%s3241_s1 + $0x420] sm:$0xff]  ;;  %v555_v16 = vld [vmem:[%s3241_s1 + $0x7f0] sm:$0xff] }
  0x57   : > { %756 = vmatpush.msra.mxu0 %v409_v17  ;;  %799 = vmatpush.msra.mxu2 %v386_v19  ;;  %v396_v17 = vld [vmem:[%s3241_s1 + $0x2f8] sm:$0xff]  ;;  %v411_v19 = vld [vmem:[%s3241_s1 + $0x370] sm:$0xff] }
  0x58   : > { %775 = vmatpush.msra.mxu1 %v545_v18  ;;  %818 = vmatpush.msra.mxu3 %v522_v20  ;;  %v532_v18 = vld [vmem:[%s3241_s1 + $0x738] sm:$0xff]  ;;  %v547_v20 = vld [vmem:[%s3241_s1 + $0x7b0] sm:$0xff] }
  0x59   : > { %757 = vmatpush.msra.mxu0 %v401_v21  ;;  %800 = vmatpush.msra.mxu2 %v378_v23  ;;  %v388_v21 = vld [vmem:[%s3241_s1 + $0x2b8] sm:$0xff]  ;;  %v403_v23 = vld [vmem:[%s3241_s1 + $0x330] sm:$0xff] }
  0x5a   : > { %776 = vmatpush.msra.mxu1 %v537_v22  ;;  %819 = vmatpush.msra.mxu3 %v514_v24  ;;  %v524_v22 = vld [vmem:[%s3241_s1 + $0x6f8] sm:$0xff]  ;;  %v557_v24 = vld [vmem:[%s2699_s18] sm:$0xff] }
  0x5b   : > { %758 = vmatpush.msra.mxu0 %v393_v25  ;;  %801 = vmatpush.msra.mxu2 %v370_v27  ;;  %v559_v25 = vld [vmem:[%s2699_s18 + $0x10] sm:$0xff]  ;;  %571 = vst [vmem:[#allocation1] ss:$2 sm:$0xff] %v557_v24 }
  0x5c   : > { %777 = vmatpush.msra.mxu1 %v529_v26  ;;  %820 = vmatpush.msra.mxu3 %v506_v28  ;;  %v560_v26 = vld [vmem:[%s2699_s18 + $0x18] sm:$0xff]  ;;  %v539_v27 = vld [vmem:[%s3241_s1 + $0x770] sm:$0xff]  ;;  %575 = vst [vmem:[#allocation1 + $0x20] ss:$2 sm:$0xff] %v559_v25 }
  0x5d   : > { %759 = vmatpush.msra.mxu0 %v385_v29  ;;  %802 = vmatpush.msra.mxu2 %v362_v31  ;;  %v380_v28 = vld [vmem:[%s3241_s1 + $0x278] sm:$0xff]  ;;  %v531_v31 = vld [vmem:[%s3241_s1 + $0x730] sm:$0xff]  ;;  %577 = vst [vmem:[#allocation1 + $0x30] ss:$2 sm:$0xff] %v560_v26 }
  0x5e   : > { %778 = vmatpush.msra.mxu1 %v521_v30  ;;  %821 = vmatpush.msra.mxu3 %v498_v32  ;;  %v516_v29 = vld [vmem:[%s3241_s1 + $0x6b8] sm:$0xff]  ;;  %v395_v30 = vld [vmem:[%s3241_s1 + $0x2f0] sm:$0xff] }
  0x5f   : > { %760 = vmatpush.msra.mxu0 %v377_v33  ;;  %803 = vmatpush.msra.mxu2 %v354_v35  ;;  %v372_v32 = vld [vmem:[%s3241_s1 + $0x238] sm:$0xff]  ;;  %v523_v35 = vld [vmem:[%s3241_s1 + $0x6f0] sm:$0xff] }
  0x60   : > { %779 = vmatpush.msra.mxu1 %v513_v34  ;;  %822 = vmatpush.msra.mxu3 %v490_v36  ;;  %v508_v33 = vld [vmem:[%s3241_s1 + $0x678] sm:$0xff]  ;;  %v387_v34 = vld [vmem:[%s3241_s1 + $0x2b0] sm:$0xff] }
  0x61   : > { %761 = vmatpush.msra.mxu0 %v369_v37  ;;  %804 = vmatpush.msra.mxu2 %v346_v39  ;;  %v364_v36 = vld [vmem:[%s3241_s1 + $0x1f8] sm:$0xff]  ;;  %v515_v39 = vld [vmem:[%s3241_s1 + $0x6b0] sm:$0xff] }
  0x62   : > { %780 = vmatpush.msra.mxu1 %v505_v38  ;;  %823 = vmatpush.msra.mxu3 %v482_v40  ;;  %v500_v37 = vld [vmem:[%s3241_s1 + $0x638] sm:$0xff]  ;;  %v379_v38 = vld [vmem:[%s3241_s1 + $0x270] sm:$0xff] }
  0x63   : > { %762 = vmatpush.msra.mxu0 %v361_v41  ;;  %805 = vmatpush.msra.mxu2 %v338_v43  ;;  %v356_v40 = vld [vmem:[%s3241_s1 + $0x1b8] sm:$0xff]  ;;  %v558_v43 = vld [vmem:[%s2699_s18 + $0x8] sm:$0xff]  ;;  %s2003_s18 = smov 64  }
  0x64   : > { %781 = vmatpush.msra.mxu1 %v497_v42  ;;  %824 = vmatpush.msra.mxu3 %v474_v44  ;;  %v492_v41 = vld [vmem:[%s3241_s1 + $0x5f8] sm:$0xff]  ;;  %v371_v42 = vld [vmem:[%s3241_s1 + $0x230] sm:$0xff]  ;;  %573 = vst [vmem:[#allocation1 + $0x10] ss:$2 sm:$0xff] %v558_v43 }
  0x65   : > { %763 = vmatpush.msra.mxu0 %v353_v45  ;;  %806 = vmatpush.msra.mxu2 %v330_v47  ;;  %v507_v44 = vld [vmem:[%s3241_s1 + $0x670] sm:$0xff]  ;;  %v348_v45 = vld [vmem:[%s3241_s1 + $0x178] sm:$0xff] }
  0x66   : > { %782 = vmatpush.msra.mxu1 %v489_v46  ;;  %825 = vmatpush.msra.mxu3 %v466_v48  ;;  %v484_v46 = vld [vmem:[%s3241_s1 + $0x5b8] sm:$0xff]  ;;  %v363_v47 = vld [vmem:[%s3241_s1 + $0x1f0] sm:$0xff] }
  0x67   : > { %764 = vmatpush.msra.mxu0 %v345_v49  ;;  %807 = vmatpush.msra.mxu2 %v322_v51  ;;  %v499_v48 = vld [vmem:[%s3241_s1 + $0x630] sm:$0xff]  ;;  %v340_v49 = vld [vmem:[%s3241_s1 + $0x138] sm:$0xff] }
  0x68   : > { %783 = vmatpush.msra.mxu1 %v481_v50  ;;  %826 = vmatpush.msra.mxu3 %v458_v52  ;;  %v476_v50 = vld [vmem:[%s3241_s1 + $0x578] sm:$0xff]  ;;  %v355_v51 = vld [vmem:[%s3241_s1 + $0x1b0] sm:$0xff] }
  0x69   : > { %765 = vmatpush.msra.mxu0 %v337_v53  ;;  %808 = vmatpush.msra.mxu2 %v314_v55  ;;  %v491_v52 = vld [vmem:[%s3241_s1 + $0x5f0] sm:$0xff]  ;;  %v332_v53 = vld [vmem:[%s3241_s1 + $0xf8] sm:$0xff] }
  0x6a   : > { %784 = vmatpush.msra.mxu1 %v473_v54  ;;  %827 = vmatpush.msra.mxu3 %v450_v56  ;;  %v468_v54 = vld [vmem:[%s3241_s1 + $0x538] sm:$0xff]  ;;  %v347_v55 = vld [vmem:[%s3241_s1 + $0x170] sm:$0xff] }
  0x6b   : > { %766 = vmatpush.msra.mxu0 %v329_v57  ;;  %809 = vmatpush.msra.mxu2 %v306_v59  ;;  %v483_v56 = vld [vmem:[%s3241_s1 + $0x5b0] sm:$0xff]  ;;  %v324_v57 = vld [vmem:[%s3241_s1 + $0xb8] sm:$0xff] }
  0x6c   : > { %785 = vmatpush.msra.mxu1 %v465_v58  ;;  %828 = vmatpush.msra.mxu3 %v442_v60  ;;  %v460_v58 = vld [vmem:[%s3241_s1 + $0x4f8] sm:$0xff]  ;;  %v339_v59 = vld [vmem:[%s3241_s1 + $0x130] sm:$0xff]  ;;  %v2820_v60 = vld.sshfl [vmem:[#allocation1] sm:$0xff pattern:$0x75316420] }
  0x6d   : > { %810 = vmatmul.f32.vlgmr.msra.gmra.mxu2 %v2254_v62  ;;  %767 = vmatpush.msra.mxu0 %v321_v0  ;;  %v2824_v0 = vld.sshfl [vmem:[#allocation1 + $0x28] sm:$0xff pattern:$0x75316420] }
  0x6e   : > { %874 = vmatpush.msrb.mxu2 %v428_v61  ;;  %786 = vmatpush.msra.mxu1 %v457_v1  ;;  %v2822_v61 = vld.sshfl [vmem:[#allocation1 + $0x20] sm:$0xff pattern:$0x75316420]  ;;  %v2826_v1 = vld.sshfl [vmem:[#allocation1 + $0x30] sm:$0xff pattern:$0x75316420] }
  0x6f   : > { %829 = vmatpush.msra.mxu3 %v434_v2  ;;  %768 = vmatpush.msra.mxu0 %v313_v5  ;;  %v2828_v2 = vld.sshfl [vmem:[#allocation1 + $0x38] sm:$0xff pattern:$0x75316420]  ;;  %v930_v5 = vld [vmem:[%s3243_s3] sm:$0xff] }
  0x70   : > { %830 = vmatmul.f32.vlgmr.msra.gmra.mxu3 %v2256_v63  ;;  %875 = vmatpush.msrb.mxu2 %v420_v3  ;;  %v475_v3 = vld [vmem:[%s3241_s1 + $0x570] sm:$0xff] }
  0x71   : > { %894 = vmatpush.msrb.mxu3 %v556_v4  ;;  %787 = vmatpush.msra.mxu1 %v449_v6  ;;  %v2833_v4 = vld.sshfl [vmem:[#allocation1 + $0x8] sm:$0xff pattern:$0x75316420]  ;;  %v316_v6 = vld [vmem:[%s3241_s1 + $0x78] sm:$0xff] }
  0x72   : > { %876 = vmatpush.msrb.mxu2 %v412_v7  ;;  %769 = vmatpush.msra.mxu0 %v305_v9  ;;  %v452_v7 = vld [vmem:[%s3241_s1 + $0x4b8] sm:$0xff]  ;;  %v2847_v9 = vld.sshfl [vmem:[#allocation1 + $0x10] sm:$0xff pattern:$0x75316420] }
  0x73   : > { %895 = vmatpush.msrb.mxu3 %v548_v8  ;;  %788 = vmatpush.msra.mxu1 %v441_v10  ;;  %v331_v8 = vld [vmem:[%s3241_s1 + $0xf0] sm:$0xff]  ;;  %v2849_v10 = vld.sshfl [vmem:[#allocation1 + $0x18] sm:$0xff pattern:$0x75316420] }
  0x74   : > { %770 = vmatmul.f32.vlgmr.msra.gmra.mxu0 %v2254_v62  ;;  %877 = vmatpush.msrb.mxu2 %v404_v12  ;;  %v308_v12 = vld [vmem:[%s3241_s1 + $0x38] sm:$0xff]  ;;  %932 = vst [vmem:[#allocation1] ss:$9 sm:$0xff] %v930_v5 }
  0x75   : > { %834 = vmatpush.msrb.mxu0 %v427_v11  ;;  %896 = vmatpush.msrb.mxu3 %v540_v13  ;;  %v467_v11 = vld [vmem:[%s3241_s1 + $0x530] sm:$0xff]  ;;  %v444_v13 = vld [vmem:[%s3241_s1 + $0x478] sm:$0xff] }
  0x76   : > { %789 = vmatpush.msra.mxu1 %v433_v14  ;;  %878 = vmatpush.msrb.mxu2 %v396_v17  ;;  %v323_v14 = vld [vmem:[%s3241_s1 + $0xb0] sm:$0xff] }
  0x77   : > { %790 = vmatmul.f32.vlgmr.msra.gmra.mxu1 %v2256_v63  ;;  %835 = vmatpush.msrb.mxu0 %v419_v15  ;;  %v459_v15 = vld [vmem:[%s3241_s1 + $0x4f0] sm:$0xff] }
  0x78   : > { %854 = vmatpush.msrb.mxu1 %v555_v16  ;;  %897 = vmatpush.msrb.mxu3 %v532_v18  ;;  %v436_v16 = vld [vmem:[%s3241_s1 + $0x438] sm:$0xff]  ;;  %v315_v17 = vld [vmem:[%s3241_s1 + $0x70] sm:$0xff] }
  0x79   : > { %836 = vmatpush.msrb.mxu0 %v411_v19  ;;  %879 = vmatpush.msrb.mxu2 %v388_v21  ;;  %v451_v18 = vld [vmem:[%s3241_s1 + $0x4b0] sm:$0xff]  ;;  %v1073_v21 = vld [vmem:[%s3244_s4] sm:$0xff] }
  0x7a   : > { %855 = vmatpush.msrb.mxu1 %v547_v20  ;;  %898 = vmatpush.msrb.mxu3 %v524_v22  ;;  %v307_v19 = vld [vmem:[%s3241_s1 + $0x30] sm:$0xff] }
  0x7b   : > { %837 = vmatpush.msrb.mxu0 %v403_v23  ;;  %880 = vmatpush.msrb.mxu2 %v380_v28  ;;  %v443_v20 = vld [vmem:[%s3241_s1 + $0x470] sm:$0xff]  ;;  %v933_v22 = vld [vmem:[#allocation1] sm:$0xff] }
  0x7c   : > { %856 = vmatpush.msrb.mxu1 %v539_v27  ;;  %899 = vmatpush.msrb.mxu3 %v516_v29  ;;  %v934_v23 = vld [vmem:[#allocation1 + $0x9] sm:$0xff]  ;;  %v935_v24 = vld [vmem:[#allocation1 + $0x12] sm:$0xff]  ;;  %v936_v25 = vld [vmem:[#allocation1 + $0x1b] sm:$0xff] }
  0x7d   : > { %838 = vmatpush.msrb.mxu0 %v395_v30  ;;  %881 = vmatpush.msrb.mxu2 %v372_v32  ;;  %v2886_v26 = vld [vmem:[#allocation1 + $0x24] sm:$0xff]  ;;  %v2888_v27 = vld [vmem:[#allocation1 + $0x2d] sm:$0xff]  ;;  %v2893_v29 = vld [vmem:[#allocation1 + $0x36] sm:$0xff]  ;;  %v947_v5 = vpack.i.b16 %v935_v24, %v935_v24 }
  0x7e   : > { %857 = vmatpush.msrb.mxu1 %v531_v31  ;;  %900 = vmatpush.msrb.mxu3 %v508_v33  ;;  %v435_v28 = vld [vmem:[%s3241_s1 + $0x430] sm:$0xff]  ;;  %v2895_v30 = vld [vmem:[#allocation1 + $0x3f] sm:$0xff] }
  0x7f   : > { %839 = vmatpush.msrb.mxu0 %v387_v34  ;;  %882 = vmatpush.msrb.mxu2 %v364_v36  ;;  %1075 = vst [vmem:[#allocation1] ss:$9 sm:$0xff] %v1073_v21 }
  0x80   : > { %858 = vmatpush.msrb.mxu1 %v523_v35  ;;  %901 = vmatpush.msrb.mxu3 %v500_v37 }
  0x81   : > { %840 = vmatpush.msrb.mxu0 %v379_v38  ;;  %883 = vmatpush.msrb.mxu2 %v356_v40  ;;  %v944_v40 = vpack.i.b16 %v934_v23, %v934_v23 }
  0x82   : > { %859 = vmatpush.msrb.mxu1 %v515_v39  ;;  %902 = vmatpush.msrb.mxu3 %v492_v41  ;;  %v941_v39 = vpack.i.b16 %v933_v22, %v933_v22 }
  0x83   : > { %841 = vmatpush.msrb.mxu0 %v371_v42  ;;  %884 = vmatpush.msrb.mxu2 %v348_v45 }
  0x84   : > { %860 = vmatpush.msrb.mxu1 %v507_v44  ;;  %903 = vmatpush.msrb.mxu3 %v484_v46  ;;  %v943_v46 = vperm.slane %v941_v39, 0 }
  0x85   : > { %842 = vmatpush.msrb.mxu0 %v363_v47  ;;  %885 = vmatpush.msrb.mxu2 %v340_v49  ;;  %v946_v49 = vperm.slane %v944_v40, 0 }
  0x86   : > { %861 = vmatpush.msrb.mxu1 %v499_v48  ;;  %904 = vmatpush.msrb.mxu3 %v476_v50  ;;  %v1076_v31 = vld [vmem:[#allocation1] sm:$0xff]  ;;  %v1077_v32 = vld [vmem:[#allocation1 + $0x9] sm:$0xff] }
  0x87   : > { %843 = vmatpush.msrb.mxu0 %v355_v51  ;;  %886 = vmatpush.msrb.mxu2 %v332_v53  ;;  %v1084_v33 = vpack.i.b16 %v1076_v31, %v1076_v31  ;;  %v1087_v34 = vpack.i.b16 %v1077_v32, %v1077_v32  ;;  %v1080_v39 = vld [vmem:[#allocation1 + $0x24] sm:$0xff]  ;;  %v1081_v40 = vld [vmem:[#allocation1 + $0x2d] sm:$0xff] }
  0x88   : > { %862 = vmatpush.msrb.mxu1 %v491_v52  ;;  %905 = vmatpush.msrb.mxu3 %v468_v54 }
  0x89   : > { %844 = vmatpush.msrb.mxu0 %v347_v55  ;;  %887 = vmatpush.msrb.mxu2 %v324_v57  ;;  %v1089_v44 = vperm.slane %v1087_v34, 0  ;;  %v973_v55 = vunpack.c.l.bf16 %v943_v46 }
  0x8a   : > { %863 = vmatpush.msrb.mxu1 %v483_v56  ;;  %906 = vmatpush.msrb.mxu3 %v460_v58  ;;  %v974_v56 = vunpack.c.l.bf16 %v946_v49 }
  0x8b   : > { %845 = vmatpush.msrb.mxu0 %v339_v59  ;;  %888 = vmatpush.msrb.mxu2 %v316_v6  ;;  %v1109_v48 = vunpack.c.l.bf16 %v1089_v44  ;;  %v950_v6 = vpack.i.b16 %v936_v25, %v936_v25 }
  0x8c   : > { %864 = vmatpush.msrb.mxu1 %v475_v3  ;;  %907 = vmatpush.msrb.mxu3 %v452_v7  ;;  %v1078_v3 = vld [vmem:[#allocation1 + $0x12] sm:$0xff] }
  0x8d   : > { %846 = vmatpush.msrb.mxu0 %v331_v8  ;;  %889 = vmatpush.msrb.mxu2 %v308_v12  ;;  %v1090_v7 = vpack.i.b16 %v1078_v3, %v1078_v3 }
  0x8e   : > { %865 = vmatpush.msrb.mxu1 %v467_v11  ;;  %908 = vmatpush.msrb.mxu3 %v444_v13 }
  0x8f   : > { %890 = vmatmul.f32.vlgmr.msrb.gmra.mxu2 %v2254_v62  ;;  %847 = vmatpush.msrb.mxu0 %v323_v14 }
  0x90   : > { %866 = vmatpush.msrb.mxu1 %v459_v15  ;;  %909 = vmatpush.msrb.mxu3 %v436_v16  ;;  %v949_v15 = vperm.slane %v947_v5, 0 }
  0x91   : > { %910 = vmatmul.f32.vlgmr.msrb.gmra.mxu3 %v2256_v63  ;;  %848 = vmatpush.msrb.mxu0 %v315_v17  ;;  %v952_v17 = vperm.slane %v950_v6, 0 }
  0x92   : > { %867 = vmatpush.msrb.mxu1 %v451_v18  ;;  %v1092_v18 = vperm.slane %v1090_v7, 0  ;;  %v975_v23 = vunpack.c.l.bf16 %v949_v15  ;;  %v1998_v7 = vmov 0  }
  0x93   : > { %849 = vmatpush.msrb.mxu0 %v307_v19  ;;  %v976_v24 = vunpack.c.l.bf16 %v952_v17  ;;  %918 = vst [vmem:[#allocation2] sm:$0xff] %v1998_v7  ;;  %1987 = vset.pattern.permute.xlu1 %v1998_v7 }
  0x94   : > { %868 = vmatpush.msrb.mxu1 %v443_v20  ;;  %850 = vmatmul.f32.vlgmr.msrb.gmra.mxu0 %v2254_v62  ;;  %v1086_v62 = vperm.slane %v1084_v33, 0  ;;  %v1110_v25 = vunpack.c.l.bf16 %v1092_v18  ;;  %919 = vst [vmem:[#allocation2 + $0x8] sm:$0xff] %v1998_v7 }
  0x95   : > { %1988 = vset.pattern.permute.xlu0 %v1998_v7  ;;  %920 = vst [vmem:[#allocation2 + $0x10] sm:$0xff] %v1998_v7 }
  0x96   : > { %869 = vmatpush.msrb.mxu1 %v435_v28  ;;  %v1108_v47 = vunpack.c.l.bf16 %v1086_v62  ;;  %v956_v62 = vpack.i.b16 %v2888_v27, %v2888_v27  ;;  %921 = vst [vmem:[#allocation2 + $0x18] sm:$0xff] %v1998_v7 }
  0x97   : > { %870 = vmatmul.f32.vlgmr.msrb.gmra.mxu1 %v2256_v63  ;;  %924 = vst [vmem:[#allocation2 + $0x24] sm:$0x33] %v1998_v7 }
  0x98   : > { %925 = vst [vmem:[#allocation2 + $0x2c] sm:$0x33] %v1998_v7 }
  0x99   : > { %926 = vst [vmem:[#allocation2 + $0x34] sm:$0x33] %v1998_v7 }
  0x9a   : > { %927 = vst [vmem:[#allocation2 + $0x3c] sm:$0x33] %v1998_v7 }
  0x9b   : > { %923 = vst.msk [vmem:[#allocation2 + $0x20] sm:$0xf] %vm922_vm8, %v1998_v7 }
  0x9c   : > { %929 = vst.msk [vmem:[#allocation2 + $0x44] sm:$0x3] %vm928_vm9, %v1998_v7 }
  0xac   : > { %v611_v35 = vpop.f32.mrf.mxu0 }
  0xad   : > { %v612_v36 = vadd.f32 %v611_v35, %v2820_v60 }
  0xae   : > { %v651_v37 = vpop.f32.mrf.mxu2  ;;  %v631_v38 = vpop.f32.mrf.mxu1 }
  0xaf   : > { %v652_v41 = vadd.f32 %v651_v37, %v2833_v4  ;;  %v632_v42 = vadd.f32 %v631_v38, %v612_v36  ;;  %v1079_v4 = vld [vmem:[#allocation1 + $0x1b] sm:$0xff] }
  0xb0   : > { %v671_v43 = vpop.f32.mrf.mxu3  ;;  %v1093_v8 = vpack.i.b16 %v1079_v4, %v1079_v4 }
  0xb1   : > { %v672_v45 = vadd.f32 %v671_v43, %v652_v41  ;;  %v1096_v41 = vpack.i.b16 %v1080_v39, %v1080_v39  ;;  %v953_v43 = vpack.i.b16 %v2886_v26, %v2886_v26 }
  0xb2   : > { %v1095_v19 = vperm.slane %v1093_v8, 0  ;;  %v1082_v8 = vld [vmem:[#allocation1 + $0x36] sm:$0xff] }
  0xb3   : > { %v914_v63 = vpack.c.bf16 %v672_v45, %v632_v42  ;;  %v1099_v42 = vpack.i.b16 %v1081_v40, %v1081_v40 }
  0xb4   : > { %v1111_v31 = vunpack.c.l.bf16 %v1095_v19 }
  0xb5   : > { %v1036_v50 = vrot.slane %v914_v63, 6  ;;  %v965_v51 = vunpack.c.l.bf16 %v914_v63  ;;  %v966_v52 = vunpack.c.h.bf16 %v914_v63  ;;  %v1101_v49 = vperm.slane %v1099_v42, 0 }
  0xb7   : > { %1040 = vrot.lane.b32.xlu1 %v1036_v50, %s1997_s28  ;;  %v1116_v53 = vmul.f32 %v1108_v47, %v965_v51  ;;  %v1117_v54 = vmul.f32 %v1109_v48, %v966_v52  ;;  %v981_v58 = vmul.f32 %v973_v55, %v965_v51  ;;  %v982_v59 = vmul.f32 %v974_v56, %v966_v52 }
  0xb8   : > { %v1098_v47 = vperm.slane %v1096_v41, 0  ;;  %v955_v50 = vperm.slane %v953_v43, 0  ;;  %v958_v51 = vperm.slane %v956_v62, 0  ;;  %v1113_v26 = vunpack.c.l.bf16 %v1101_v49 }
  0xb9   : > { %v1124_v57 = vpack.c.bf16 %v1117_v54, %v1116_v53  ;;  %v989_v60 = vpack.c.bf16 %v982_v59, %v981_v58 }
  0xba   : > { %v1112_v55 = vunpack.c.l.bf16 %v1098_v47  ;;  %v978_v58 = vunpack.c.l.bf16 %v958_v51 }
  0xbb   : > { %1132 = vrot.lane.b32.xlu0 %v1124_v57, %s1997_s28  ;;  %v977_v57 = vunpack.c.l.bf16 %v955_v50 }
  0xc3   : > { %997 = vrot.lane.b32.xlu0 %v989_v60, %s1997_s28 }
  0xce   : > { %v731_v12 = vpop.f32.mrf.mxu2 }
  0xcf   : > { %v691_v11 = vpop.f32.mrf.mxu0  ;;  %v732_v14 = vadd.f32 %v731_v12, %v2849_v10  ;;  %v959_v12 = vpack.i.b16 %v2893_v29, %v2893_v29 }
  0xd0   : > { %v692_v13 = vadd.f32 %v691_v11, %v2847_v9  ;;  %v1083_v11 = vld [vmem:[#allocation1 + $0x3f] sm:$0xff] }
  0xd1   : > { %v751_v16 = vpop.f32.mrf.mxu3  ;;  %v1105_v15 = vpack.i.b16 %v1083_v11, %v1083_v11 }
  0xd2   : > { %v711_v20 = vpop.f32.mrf.mxu1  ;;  %v752_v21 = vadd.f32 %v751_v16, %v732_v14  ;;  %v1102_v14 = vpack.i.b16 %v1082_v8, %v1082_v8 }
  0xd3   : > { %v712_v22 = vadd.f32 %v711_v20, %v692_v13  ;;  %v962_v13 = vpack.i.b16 %v2895_v30, %v2895_v30  ;;  %v961_v20 = vperm.slane %v959_v12, 0 }
  0xd5   : > { %v915_v28 = vpack.c.bf16 %v752_v21, %v712_v22  ;;  %v964_v21 = vperm.slane %v962_v13, 0  ;;  %v1104_v22 = vperm.slane %v1102_v14, 0  ;;  %v979_v29 = vunpack.c.l.bf16 %v961_v20 }
  0xd7   : > { %v967_v32 = vunpack.c.l.bf16 %v915_v28  ;;  %v968_v33 = vunpack.c.h.bf16 %v915_v28  ;;  %v1037_v34 = vrot.slane %v915_v28, 6  ;;  %v1114_v30 = vunpack.c.l.bf16 %v1104_v22 }
  0xd9   : > { %v983_v35 = vmul.f32 %v975_v23, %v967_v32  ;;  %v984_v9 = vmul.f32 %v976_v24, %v968_v33  ;;  %v1118_v36 = vmul.f32 %v1110_v25, %v967_v32  ;;  %v1119_v10 = vmul.f32 %v1111_v31, %v968_v33  ;;  %1042 = vrot.lane.b32.xlu2 %v1037_v34, %s1997_s28 }
  0xda   : > { %v1107_v23 = vperm.slane %v1105_v15, 0  ;;  %v980_v33 = vunpack.c.l.bf16 %v964_v21 }
  0xdb   : > { %v990_v37 = vpack.c.bf16 %v984_v9, %v983_v35  ;;  %v1125_v38 = vpack.c.bf16 %v1119_v10, %v1118_v36 }
  0xdc   : > { %v1115_v34 = vunpack.c.l.bf16 %v1107_v23 }
  0xdd   : > { %999 = vrot.lane.b32.xlu1 %v990_v37, %s1997_s28  ;;  %1134 = vrot.lane.b32.xlu0 %v1125_v38, %s1997_s28 }
  0xf0   : > { %v811_v44 = vpop.f32.mrf.mxu2 }
  0xf1   : > { %v771_v45 = vpop.f32.mrf.mxu0  ;;  %v812_v46 = vadd.f32 %v811_v44, %v2824_v0 }
  0xf2   : > { %v772_v63 = vadd.f32 %v771_v45, %v2822_v61 }
  0xf3   : > { %v831_v48 = vpop.f32.mrf.mxu3 }
  0xf4   : > { %v791_v52 = vpop.f32.mrf.mxu1  ;;  %v832_v53 = vadd.f32 %v831_v48, %v812_v46 }
  0xf5   : > { %v792_v54 = vadd.f32 %v791_v52, %v772_v63 }
  0xf7   : > { %v916_v56 = vpack.c.bf16 %v832_v53, %v792_v54 }
  0xf9   : > { %v969_v27 = vunpack.c.l.bf16 %v916_v56  ;;  %v970_v59 = vunpack.c.h.bf16 %v916_v56  ;;  %v1038_v60 = vrot.slane %v916_v56, 6 }
  0xfb   : > { %1044 = vrot.lane.b32.xlu2 %v1038_v60, %s1997_s28  ;;  %v1120_v0 = vmul.f32 %v1112_v55, %v969_v27  ;;  %v1121_v61 = vmul.f32 %v1113_v26, %v970_v59  ;;  %v985_v3 = vmul.f32 %v977_v57, %v969_v27  ;;  %v986_v4 = vmul.f32 %v978_v58, %v970_v59 }
  0xfd   : > { %v1126_v5 = vpack.c.bf16 %v1121_v61, %v1120_v0  ;;  %v991_v6 = vpack.c.bf16 %v986_v4, %v985_v3 }
  0xff   : > { %1136 = vrot.lane.b32.xlu1 %v1126_v5, %s1997_s28 }
 0x103   : > { %1001 = vrot.lane.b32.xlu2 %v991_v6, %s1997_s28 }
 0x111   : > { %v851_v16 = vpop.f32.mrf.mxu0 }
 0x112   : > { %v891_v17 = vpop.f32.mrf.mxu2  ;;  %v852_v18 = vadd.f32 %v851_v16, %v2826_v1 }
 0x113   : > { %v892_v19 = vadd.f32 %v891_v17, %v2828_v2 }
 0x114   : > { %v871_v28 = vpop.f32.mrf.mxu1  ;;  %v911_v24 = vpop.f32.mrf.mxu3 }
 0x115   : > { %v872_v25 = vadd.f32 %v871_v28, %v852_v18  ;;  %v912_v31 = vadd.f32 %v911_v24, %v892_v19 }
 0x117   : > { %v917_v32 = vpack.c.bf16 %v912_v31, %v872_v25 }
 0x119   : > { %v971_v35 = vunpack.c.l.bf16 %v917_v32  ;;  %v972_v9 = vunpack.c.h.bf16 %v917_v32  ;;  %v1039_v36 = vrot.slane %v917_v32, 6 }
 0x11b   : > { %1046 = vrot.lane.b32.xlu1 %v1039_v36, %s1997_s28  ;;  %v987_v1 = vmul.f32 %v979_v29, %v971_v35  ;;  %v988_v2 = vmul.f32 %v980_v33, %v972_v9  ;;  %v1122_v10 = vmul.f32 %v1114_v30, %v971_v35  ;;  %v1123_v37 = vmul.f32 %v1115_v34, %v972_v9 }
 0x11d   : > { %v992_v38 = vpack.c.bf16 %v988_v2, %v987_v1  ;;  %v1127_v39 = vpack.c.bf16 %v1123_v37, %v1122_v10 }
 0x11f   : > { %1003 = vrot.lane.b32.xlu2 %v992_v38, %s1997_s28  ;;  %1138 = vrot.lane.b32.xlu0 %v1127_v39, %s1997_s28 }
 0x129   : > { %v1041_v40 = vpop.permute.xlu1 %1040 }
 0x12a   : > { %v1048_v41 = vrot.slane %v1041_v40, 4 }
 0x12c   : > { %v1052_v42 = vsel %vm1009_vm2, %v1048_v41, %v1041_v40 }
 0x12d   : > { %1067 = vst.msk [vmem:[#allocation2] sm:$0xcc] %vm1066_vm3, %v1052_v42  ;;  %v1133_v43 = vpop.permute.xlu0 %1132  ;;  %vm1284_vm3 = vcmask 785408  }
 0x12e   : > { %v1140_v44 = vrot.slane %v1133_v43, 4 }
 0x130   : > { %v1144_v45 = vsel %vm1009_vm2, %v1140_v44, %v1133_v43 }
 0x131   : > { %1156 = vst.msk [vmem:[#allocation2 + $0x24] sm:$0x33] %vm2938_vm6, %v1144_v45 }
 0x133   : > { %v1043_v46 = vpop.permute.xlu2 %1042 }
 0x134   : > { %v1049_v63 = vrot.slane %v1043_v46, 4  ;;  %v1441_v47 = vld [vmem:[#allocation2] sm:$0xcc] }
 0x135   : > { %1451 = vrot.lane.b32.xlu2 %v1441_v47, %s1999_s29  ;;  %v998_v49 = vpop.permute.xlu0 %997  ;;  %v1169_v54 = vld [vmem:[#allocation2] sm:$0xcc] }
 0x136   : > { %v1053_v48 = vsel %vm1011_vm7, %v1048_v41, %v1049_v63  ;;  %v1005_v51 = vrot.slane %v998_v49, 4  ;;  %v1300_v26 = vld [vmem:[#allocation2] sm:$0xcc] }
 0x137   : > { %v1054_v50 = vsel %vm1009_vm2, %v1053_v48, %v1043_v46  ;;  %v1871_v27 = vrot.slane %v1300_v26, 10 }
 0x138   : > { %1068 = vst [vmem:[#allocation2 + $0x8] sm:$0xcc] %v1054_v50  ;;  %v1211_v52 = vld [vmem:[#allocation2 + $0x24] sm:$0x33]  ;;  %v1010_v53 = vsel %vm1009_vm2, %v1005_v51, %v998_v49 }
 0x139   : > { %1221 = vrot.lane.b32.xlu0 %v1211_v52, %s2000_s30  ;;  %1026 = vst.msk [vmem:[#allocation2] sm:$0x33] %vm2938_vm6, %v1010_v53  ;;  %v1352_v55 = vld [vmem:[#allocation2 + $0x24] sm:$0x33] }
 0x13a   : > { %v1362_v56 = vrot.slane %v1352_v55, 6  ;;  %v1483_v61 = vld [vmem:[#allocation2 + $0x24] sm:$0x33] }
 0x13d   : > { %1179 = vrot.lane.b32.xlu2 %v1169_v54, %s2001_s9 }
 0x13f   : > { %v1442_v0 = vld [vmem:[#allocation2 + $0x8] sm:$0xcc] }
 0x140   : > { %v1161_v57 = vld [vmem:[#allocation2] sm:$0x33]  ;;  %v1301_v3 = vld [vmem:[#allocation2 + $0x8] sm:$0xcc] }
 0x141   : > { %v1399_v58 = vld [vmem:[#allocation2] sm:$0x33]  ;;  %1165 = vst [vmem:[#allocation3] sm:$0x33] %v1161_v57  ;;  %1367 = vrot.lane.b32.xlu0 %v1362_v56, %s2002_s10  ;;  %v1872_v11 = vrot.slane %v1301_v3, 10 }
 0x142   : > { %1409 = vrot.lane.b32.xlu1 %v1399_v58, %s2003_s18  ;;  %v1253_v59 = vld [vmem:[#allocation2] sm:$0x33]  ;;  %v1170_v17 = vld [vmem:[#allocation2 + $0x8] sm:$0xcc] }
 0x143   : > { %v1263_v60 = vrot.slane %v1253_v59, 6 }
 0x145   : > { %1320 = vrot.lane.b32.xlu2 %v1871_v27, %s2004_s8 }
 0x149   : > { %1453 = vrot.lane.b32.xlu0 %v1442_v0, %s1999_s29 }
 0x14a   : > { %1268 = vrot.lane.b32.xlu1 %v1263_v60, %s2005_s11 }
 0x14d   : > { %1493 = vrot.lane.b32.xlu2 %v1483_v61, %s2006_s12 }
 0x14f   : > { %v1000_v4 = vpop.permute.xlu1 %999  ;;  %v1135_v5 = vpop.permute.xlu0 %1134 }
 0x150   : > { %v1006_v6 = vrot.slane %v1000_v4, 4  ;;  %v1141_v8 = vrot.slane %v1135_v5, 4 }
 0x151   : > { %1322 = vrot.lane.b32.xlu0 %v1872_v11, %s2004_s8 }
 0x152   : > { %v1012_v12 = vsel %vm1011_vm7, %v1005_v51, %v1006_v6  ;;  %v1145_v13 = vsel %vm1011_vm7, %v1140_v44, %v1141_v8 }
 0x153   : > { %v1013_v14 = vsel %vm1009_vm2, %v1012_v12, %v1000_v4  ;;  %v1146_v15 = vsel %vm1009_vm2, %v1145_v13, %v1135_v5 }
 0x154   : > { %1027 = vst [vmem:[#allocation2 + $0x8] sm:$0x33] %v1013_v14 }
 0x155   : > { %1157 = vst [vmem:[#allocation2 + $0x2c] sm:$0x33] %v1146_v15  ;;  %v2964_v16 = vpop.permute.xlu2 %1044  ;;  %1181 = vrot.lane.b32.xlu2 %v1170_v17, %s2001_s9 }
 0x156   : > { %v1050_v18 = vrot.slane %v2964_v16, 4 }
 0x158   : > { %v1055_v19 = vsel %vm1011_vm7, %v1049_v63, %v1050_v18 }
 0x159   : > { %v1056_v20 = vsel %vm1009_vm2, %v1055_v19, %v2964_v16 }
 0x15a   : > { %1069 = vst [vmem:[#allocation2 + $0x10] sm:$0xcc] %v1056_v20 }
 0x15b   : > { %v1162_v21 = vld [vmem:[#allocation2 + $0x8] sm:$0x33] }
 0x15c   : > { %v1400_v22 = vld [vmem:[#allocation2 + $0x8] sm:$0x33]  ;;  %1166 = vst [vmem:[#allocation3 + $0x8] sm:$0x33] %v1162_v21 }
 0x15d   : > { %1411 = vrot.lane.b32.xlu1 %v1400_v22, %s2003_s18  ;;  %v1484_v23 = vld [vmem:[#allocation2 + $0x2c] sm:$0x33]  ;;  %v1002_v24 = vpop.permute.xlu2 %1001 }
 0x15e   : > { %v1353_v28 = vld [vmem:[#allocation2 + $0x2c] sm:$0x33]  ;;  %1495 = vrot.lane.b32.xlu0 %v1484_v23, %s2006_s12  ;;  %v1007_v31 = vrot.slane %v1002_v24, 4 }
 0x15f   : > { %v1363_v25 = vrot.slane %v1353_v28, 6  ;;  %v1254_v32 = vld [vmem:[#allocation2 + $0x8] sm:$0x33] }
 0x160   : > { %v1014_v29 = vsel %vm1011_vm7, %v1006_v6, %v1007_v31  ;;  %v1264_v30 = vrot.slane %v1254_v32, 6  ;;  %v1212_v34 = vld [vmem:[#allocation2 + $0x2c] sm:$0x33] }
 0x161   : > { %1369 = vrot.lane.b32.xlu2 %v1363_v25, %s2002_s10  ;;  %v1015_v33 = vsel %vm1009_vm2, %v1014_v29, %v1002_v24  ;;  %v1443_v36 = vld [vmem:[#allocation2 + $0x10] sm:$0xcc] }
 0x162   : > { %1028 = vst [vmem:[#allocation2 + $0x10] sm:$0x33] %v1015_v33  ;;  %v1171_v1 = vld [vmem:[#allocation2 + $0x10] sm:$0xcc] }
 0x163   : > { %v1302_v2 = vld [vmem:[#allocation2 + $0x10] sm:$0xcc] }
 0x164   : > { %v1873_v38 = vrot.slane %v1302_v2, 10 }
 0x165   : > { %1223 = vrot.lane.b32.xlu1 %v1212_v34, %s2000_s30 }
 0x166   : > { %1270 = vrot.lane.b32.xlu0 %v1264_v30, %s2005_s11 }
 0x169   : > { %v1163_v35 = vld [vmem:[#allocation2 + $0x10] sm:$0x33] }
 0x16a   : > { %v1401_v9 = vld [vmem:[#allocation2 + $0x10] sm:$0x33]  ;;  %1167 = vst [vmem:[#allocation3 + $0x10] sm:$0x33] %v1163_v35 }
 0x16b   : > { %1413 = vrot.lane.b32.xlu2 %v1401_v9, %s2003_s18  ;;  %v1255_v63 = vld [vmem:[#allocation2 + $0x10] sm:$0x33] }
 0x16c   : > { %v1265_v47 = vrot.slane %v1255_v63, 6 }
 0x16d   : > { %1455 = vrot.lane.b32.xlu1 %v1443_v36, %s1999_s29 }
 0x16e   : > { %1183 = vrot.lane.b32.xlu0 %v1171_v1, %s2001_s9 }
 0x171   : > { %v1137_v10 = vpop.permute.xlu1 %1136 }
 0x172   : > { %v1142_v37 = vrot.slane %v1137_v10, 4 }
 0x174   : > { %v1147_v39 = vsel %vm1011_vm7, %v1141_v8, %v1142_v37 }
 0x175   : > { %1324 = vrot.lane.b32.xlu1 %v1873_v38, %s2004_s8  ;;  %v1148_v40 = vsel %vm1009_vm2, %v1147_v39, %v1137_v10 }
 0x176   : > { %1158 = vst [vmem:[#allocation2 + $0x34] sm:$0x33] %v1148_v40 }
 0x179   : > { %v1004_v41 = vpop.permute.xlu2 %1003 }
 0x17a   : > { %v1008_v42 = vrot.slane %v1004_v41, 4 }
 0x17c   : > { %v1016_v43 = vsel %vm1011_vm7, %v1007_v31, %v1008_v42  ;;  %1031 = vst.msk [vmem:[#allocation2 + $0x20] sm:$0x3] %vm1030_vm10, %v1008_v42 }
 0x17d   : > { %v1213_v62 = vld [vmem:[#allocation2 + $0x34] sm:$0x33]  ;;  %v1017_v45 = vsel %vm1009_vm2, %v1016_v43, %v1004_v41 }
 0x17e   : > { %v1485_v44 = vld [vmem:[#allocation2 + $0x34] sm:$0x33]  ;;  %1225 = vrot.lane.b32.xlu2 %v1213_v62, %s2000_s30  ;;  %1029 = vst [vmem:[#allocation2 + $0x18] sm:$0x33] %v1017_v45 }
 0x17f   : > { %1497 = vrot.lane.b32.xlu1 %v1485_v44, %s2006_s12  ;;  %v1354_v46 = vld [vmem:[#allocation2 + $0x34] sm:$0x33] }
 0x180   : > { %v1364_v7 = vrot.slane %v1354_v46, 6 }
 0x182   : > { %1371 = vrot.lane.b32.xlu0 %v1364_v7, %s2002_s10 }
 0x183   : > { %v1403_v12 = vld [vmem:[#allocation2 + $0x20] sm:$0x3] }
 0x184   : > { %v1257_v9 = vld [vmem:[#allocation2 + $0x20] sm:$0x3] }
 0x185   : > { %v1164_v48 = vld [vmem:[#allocation2 + $0x18] sm:$0x33] }
 0x186   : > { %1168 = vst [vmem:[#allocation3 + $0x18] sm:$0x33] %v1164_v48  ;;  %v1402_v17 = vld [vmem:[#allocation2 + $0x18] sm:$0x33] }
 0x187   : > { %1272 = vrot.lane.b32.xlu1 %v1265_v47, %s2005_s11  ;;  %v1256_v28 = vld [vmem:[#allocation2 + $0x18] sm:$0x33] }
 0x188   : > { %v1266_v25 = vrot.slane %v1256_v28, 6 }
 0x18d   : > { %v1047_v49 = vpop.permute.xlu1 %1046 }
 0x18e   : > { %v1051_v50 = vrot.slane %v1047_v49, 4 }
 0x18f   : > { %v2995_v51 = vpop.permute.xlu2 %1451 }
 0x190   : > { %v1057_v52 = vsel %vm1011_vm7, %v1050_v18, %v1051_v50  ;;  %1072 = vst.msk [vmem:[#allocation2 + $0x20] sm:$0xc] %vm1071_vm11, %v1051_v50  ;;  %v1461_v1 = vrot.slane %v2995_v51, 4 }
 0x191   : > { %v1058_v53 = vsel %vm1009_vm2, %v1057_v52, %v1047_v49  ;;  %v1139_v54 = vpop.permute.xlu0 %1138 }
 0x192   : > { %1070 = vst [vmem:[#allocation2 + $0x18] sm:$0xcc] %v1058_v53  ;;  %v1143_v55 = vrot.slane %v1139_v54, 4 }
 0x194   : > { %v1149_v56 = vsel %vm1011_vm7, %v1142_v37, %v1143_v55  ;;  %1160 = vst.msk [vmem:[#allocation2 + $0x44] sm:$0x3] %vm1030_vm10, %v1143_v55  ;;  %v1267_v37 = vrot.slane %v1257_v9, 6 }
 0x195   : > { %v1150_v26 = vsel %vm1009_vm2, %v1149_v56, %v1139_v54  ;;  %vm1237_vm2 = vcmask 1031168  }
 0x196   : > { %1159 = vst [vmem:[#allocation2 + $0x3c] sm:$0x33] %v1150_v26 }
 0x197   : > { %v1445_v57 = vld [vmem:[#allocation2 + $0x20] sm:$0xc]  ;;  %v1180_v27 = vpop.permute.xlu2 %1179 }
 0x198   : > { %v1173_v58 = vld [vmem:[#allocation2 + $0x20] sm:$0xc]  ;;  %1459 = vrot.lane.b32.xlu0 %v1445_v57, %s1999_s29  ;;  %v1189_v19 = vrot.slane %v1180_v27, 4 }
 0x199   : > { %1187 = vrot.lane.b32.xlu2 %v1173_v58, %s2001_s9  ;;  %v1172_v59 = vld [vmem:[#allocation2 + $0x18] sm:$0xcc]  ;;  %v1304_v60 = vld [vmem:[#allocation2 + $0x20] sm:$0xc] }
 0x19a   : > { %1185 = vrot.lane.b32.xlu1 %v1172_v59, %s2001_s9  ;;  %v1875_v0 = vrot.slane %v1304_v60, 10  ;;  %v1444_v61 = vld [vmem:[#allocation2 + $0x18] sm:$0xcc] }
 0x19b   : > { %v1487_v4 = vld [vmem:[#allocation2 + $0x44] sm:$0x3]  ;;  %v1303_v5 = vld [vmem:[#allocation2 + $0x18] sm:$0xcc] }
 0x19c   : > { %v1874_v6 = vrot.slane %v1303_v5, 10  ;;  %v1356_v13 = vld [vmem:[#allocation2 + $0x44] sm:$0x3] }
 0x19d   : > { %v1486_v8 = vld [vmem:[#allocation2 + $0x3c] sm:$0x33]  ;;  %v1366_v16 = vrot.slane %v1356_v13, 6  ;;  %v1215_v33 = vld [vmem:[#allocation2 + $0x44] sm:$0x3] }
 0x19e   : > { %v1355_v15 = vld [vmem:[#allocation2 + $0x3c] sm:$0x33] }
 0x19f   : > { %v1321_v3 = vpop.permute.xlu2 %1320  ;;  %v1365_v20 = vrot.slane %v1355_v15, 6  ;;  %v1214_v31 = vld [vmem:[#allocation2 + $0x3c] sm:$0x33] }
 0x1a0   : > { %1328 = vrot.lane.b32.xlu0 %v1875_v0, %s2004_s8  ;;  %v1330_v42 = vrot.slane %v1321_v3, 4 }
 0x1a1   : > { %1457 = vrot.lane.b32.xlu2 %v1444_v61, %s1999_s29 }
 0x1a2   : > { %1501 = vrot.lane.b32.xlu1 %v1487_v4, %s2006_s12 }
 0x1a7   : > { %v3010_v11 = vpop.permute.xlu2 %1493 }
 0x1a8   : > { %1499 = vrot.lane.b32.xlu0 %v1486_v8, %s2006_s12  ;;  %v1503_v49 = vrot.slane %v3010_v11, 4 }
 0x1a9   : > { %1326 = vrot.lane.b32.xlu2 %v1874_v6, %s2004_s8 }
 0x1aa   : > { %1417 = vrot.lane.b32.xlu1 %v1403_v12, %s2003_s18 }
 0x1ab   : > { %v3015_v14 = vpop.permute.xlu0 %1221 }
 0x1ac   : > { %v1231_v57 = vrot.slane %v3015_v14, 4 }
 0x1af   : > { %v3017_v18 = vpop.permute.xlu2 %1181 }
 0x1b0   : > { %1415 = vrot.lane.b32.xlu0 %v1402_v17, %s2003_s18  ;;  %v1190_v21 = vrot.slane %v3017_v18, 4 }
 0x1b1   : > { %1375 = vrot.lane.b32.xlu2 %v1366_v16, %s2002_s10 }
 0x1b2   : > { %1373 = vrot.lane.b32.xlu1 %v1365_v20, %s2002_s10  ;;  %v1194_v22 = vsel %vm1011_vm7, %v1189_v19, %v1190_v21 }
 0x1b3   : > { %v1196_v23 = vsel %vm1195_vm12, %v1180_v27, %v1194_v22  ;;  %v1368_v24 = vpop.permute.xlu0 %1367 }
 0x1b4   : > { %1207 = vst [vmem:[#allocation3] sm:$0xcc] %v1196_v23  ;;  %v1377_v29 = vrot.slane %v1368_v24, 4  ;;  %v1410_v34 = vpop.permute.xlu1 %1409 }
 0x1b5   : > { %v1419_v7 = vrot.slane %v1410_v34, 4 }
 0x1b8   : > { %1227 = vrot.lane.b32.xlu0 %v1214_v31, %s2000_s30 }
 0x1b9   : > { %1274 = vrot.lane.b32.xlu2 %v1266_v25, %s2005_s11 }
 0x1ba   : > { %1229 = vrot.lane.b32.xlu1 %v1215_v33, %s2000_s30 }
 0x1bb   : > { %v3029_v32 = vpop.permute.xlu2 %1369  ;;  %v3036_v36 = vpop.permute.xlu0 %1453 }
 0x1bc   : > { %v1378_v30 = vrot.slane %v3029_v32, 4  ;;  %v1462_v10 = vrot.slane %v3036_v36, 4  ;;  %v1269_v40 = vpop.permute.xlu1 %1268 }
 0x1bd   : > { %v1278_v59 = vrot.slane %v1269_v40, 4 }
 0x1be   : > { %v1382_v35 = vsel %vm1011_vm7, %v1377_v29, %v1378_v30  ;;  %v1466_v38 = vsel %vm1011_vm7, %v1461_v1, %v1462_v10 }
 0x1bf   : > { %v1384_v2 = vsel %vm1383_vm13, %v1368_v24, %v1382_v35  ;;  %v1468_v39 = vsel %vm1467_vm14, %v2995_v51, %v1466_v38 }
 0x1c0   : > { %1395 = vst [vmem:[#allocation3 + $0x40] sm:$0xcc] %v1384_v2  ;;  %1276 = vrot.lane.b32.xlu0 %v1267_v37, %s2005_s11 }
 0x1c1   : > { %1479 = vst [vmem:[#allocation3 + $0x60] sm:$0xcc] %v1468_v39  ;;  %v1878_v39 = vld [vmem:[#allocation3] sm:$0xf] }
 0x1c3   : > { %v3047_v41 = vpop.permute.xlu0 %1322 }
 0x1c4   : > { %v1331_v43 = vrot.slane %v3047_v41, 4 }
 0x1c5   : > { %v3054_v45 = vpop.permute.xlu2 %1413 }
 0x1c6   : > { %v1335_v62 = vsel %vm1011_vm7, %v1330_v42, %v1331_v43  ;;  %v1421_v63 = vrot.slane %v3054_v45, 4 }
 0x1c7   : > { %v1337_v44 = vsel %vm1336_vm15, %v1321_v3, %v1335_v62 }
 0x1c8   : > { %1348 = vst [vmem:[#allocation3 + $0x40] sm:$0x33] %v1337_v44 }
 0x1cf   : > { %v1412_v46 = vpop.permute.xlu1 %1411  ;;  %v1910_v35 = vld [vmem:[#allocation3 + $0x40] sm:$0xf]  ;;  %v1961_v9 = vld [vmem:[#allocation3 + $0x44] sm:$0xf] }
 0x1d0   : > { %v1420_v47 = vrot.slane %v1412_v46, 4  ;;  %v3057_v48 = vpop.permute.xlu0 %1495 }
 0x1d1   : > { %v1504_v50 = vrot.slane %v3057_v48, 4 }
 0x1d2   : > { %v1424_v51 = vsel %vm1011_vm7, %v1419_v7, %v1420_v47  ;;  %v1427_v52 = vsel %vm1011_vm7, %v1420_v47, %v1421_v63 }
 0x1d3   : > { %v1426_v53 = vsel %vm1425_vm0, %v1410_v34, %v1424_v51  ;;  %v1428_v54 = vsel %vm1425_vm0, %v1412_v46, %v1427_v52  ;;  %v1508_v55 = vsel %vm1011_vm7, %v1503_v49, %v1504_v50 }
 0x1d4   : > { %1437 = vst [vmem:[#allocation3 + $0x60] sm:$0x33] %v1426_v53  ;;  %v1510_v56 = vsel %vm1509_vm1, %v3010_v11, %v1508_v55 }
 0x1d5   : > { %1438 = vst [vmem:[#allocation3 + $0x68] sm:$0x33] %v1428_v54 }
 0x1d6   : > { %1521 = vst [vmem:[#allocation3 + $0x80] sm:$0x33] %v1510_v56 }
 0x1d7   : > { %v1224_v26 = vpop.permute.xlu1 %1223 }
 0x1d8   : > { %v1232_v58 = vrot.slane %v1224_v26, 4  ;;  %v3073_v27 = vpop.permute.xlu0 %1270  ;;  %v3075_v60 = vpop.permute.xlu2 %1225 }
 0x1d9   : > { %v1279_v0 = vrot.slane %v3073_v27, 4  ;;  %v1233_v61 = vrot.slane %v3075_v60, 4 }
 0x1da   : > { %v1236_v3 = vsel %vm1011_vm7, %v1231_v57, %v1232_v58 }
 0x1db   : > { %v1238_v4 = vsel %vm1237_vm2, %v3015_v14, %v1236_v3  ;;  %v1283_v5 = vsel %vm1011_vm7, %v1278_v59, %v1279_v0  ;;  %v1239_v6 = vsel %vm1011_vm7, %v1232_v58, %v1233_v61  ;;  %v1965_v25 = vld [vmem:[#allocation3 + $0x5c] sm:$0xf0]  ;;  %v1912_v31 = vld [vmem:[#allocation3 + $0x60] sm:$0xf0] }
 0x1dc   : > { %1249 = vst [vmem:[#allocation3 + $0x20] sm:$0x33] %v1238_v4  ;;  %v1285_v8 = vsel %vm1284_vm3, %v1269_v40, %v1283_v5  ;;  %v1240_v11 = vsel %vm1237_vm2, %v1224_v26, %v1239_v6  ;;  %v1911_v1 = vor.u32 %v1965_v25, %v1910_v35  ;;  %v1915_v2 = vor.u32 %v1961_v9, %v1912_v31  ;;  %v1953_v40 = vld [vmem:[#allocation3 + $0x4] sm:$0xf]  ;;  %v3153_v35 = vld [vmem:[%s3245_s5] sm:$0xf] }
 0x1dd   : > { %1296 = vst [vmem:[#allocation3 + $0x20] sm:$0xcc] %v1285_v8  ;;  %v1542_v12 = vld [vmem:[#allocation3 + $0x80] sm:$0x33] }
 0x1de   : > { %1250 = vst [vmem:[#allocation3 + $0x28] sm:$0x33] %v1240_v11  ;;  %v1604_v13 = vunpack.c.l.b16 %v1542_v12  ;;  %v1605_v15 = vunpack.c.h.b16 %v1542_v12 }
 0x1df   : > { %v1456_v16 = vpop.permute.xlu1 %1455 }
 0x1e0   : > { %v1463_v14 = vrot.slane %v1456_v16, 4  ;;  %v3090_v17 = vpop.permute.xlu0 %1183  ;;  %v1628_v19 = vpack.c.b16 %v1604_v13, %v1604_v13  ;;  %v1629_v20 = vpack.c.b16 %v1605_v15, %v1605_v15 }
 0x1e1   : > { %v1191_v22 = vrot.slane %v3090_v17, 4 }
 0x1e2   : > { %v1469_v23 = vsel %vm1011_vm7, %v1462_v10, %v1463_v14  ;;  %v1658_v28 = vsel %vm1656_vm4, %v1628_v19, 0  ;;  %v1661_v24 = vsel %vm1656_vm4, %v1629_v20, 0 }
 0x1e3   : > { %v1470_v29 = vsel %vm1467_vm14, %v3036_v36, %v1469_v23  ;;  %v1197_v33 = vsel %vm1011_vm7, %v1190_v21, %v1191_v22  ;;  %1686 = vmatpush.bf16.msra.mxu0 %v1658_v28  ;;  %1699 = vmatpush.bf16.msra.mxu1 %v1661_v24 }
 0x1e4   : > { %1480 = vst [vmem:[#allocation3 + $0x68] sm:$0xcc] %v1470_v29  ;;  %v1198_v34 = vsel %vm1195_vm12, %v3017_v18, %v1197_v33  ;;  %v1957_v10 = vld [vmem:[#allocation3 + $0x1c] sm:$0xf0]  ;;  %v1880_v37 = vld [vmem:[#allocation3 + $0x20] sm:$0xf0] }
 0x1e5   : > { %1208 = vst [vmem:[#allocation3 + $0x8] sm:$0xcc] %v1198_v34  ;;  %v1879_v21 = vor.u32 %v1957_v10, %v1878_v39  ;;  %v1883_v42 = vor.u32 %v1953_v40, %v1880_v37 }
 0x1e7   : > { %1687 = vmatpush.bf16.msra.mxu0 %v1911_v1  ;;  %1700 = vmatpush.bf16.msra.mxu1 %v1915_v2  ;;  %v1325_v36 = vpop.permute.xlu1 %1324 }
 0x1e8   : > { %v1332_v38 = vrot.slane %v1325_v36, 4 }
 0x1ea   : > { %v1338_v62 = vsel %vm1011_vm7, %v1331_v43, %v1332_v38 }
 0x1eb   : > { %v1339_v18 = vsel %vm1336_vm15, %v3047_v41, %v1338_v62  ;;  %1688 = vmatpush.bf16.msra.mxu0 %v1879_v21  ;;  %1701 = vmatpush.bf16.msra.mxu1 %v1883_v42  ;;  %v1966_v8 = vld [vmem:[#allocation3 + $0x64] sm:$0xf0]  ;;  %v1920_v11 = vld [vmem:[#allocation3 + $0x68] sm:$0xf0] }
 0x1ec   : > { %1349 = vst [vmem:[#allocation3 + $0x48] sm:$0x33] %v1339_v18  ;;  %v1886_v23 = vld [vmem:[#allocation3 + $0x8] sm:$0xf]  ;;  %v1954_v28 = vld [vmem:[#allocation3 + $0xc] sm:$0xf] }
 0x1ee   : > { %1940 = vmatmul.msk.bf16.vlgmr.msra.gmra.mxu0 %vm1652_vm5, %v3153_v35  ;;  %1941 = vmatmul.msk.bf16.vlgmr.msra.gmra.mxu1 %vm1652_vm5, %v3153_v35 }
 0x1f1   : > { %v3112_v44 = vpop.permute.xlu1 %1497 }
 0x1f2   : > { %v1505_v46 = vrot.slane %v3112_v44, 4 }
 0x1f3   : > { %v3115_v7 = vpop.permute.xlu2 %1187 }
 0x1f4   : > { %v1511_v47 = vsel %vm1011_vm7, %v1504_v50, %v1505_v46  ;;  %v3122_v49 = vpop.permute.xlu0 %1371  ;;  %v1193_v9 = vrot.slane %v3115_v7, 4 }
 0x1f5   : > { %v1512_v41 = vsel %vm1509_vm1, %v3057_v48, %v1511_v47  ;;  %v1379_v43 = vrot.slane %v3122_v49, 4 }
 0x1f6   : > { %1522 = vst [vmem:[#allocation3 + $0x88] sm:$0x33] %v1512_v41 }
 0x1f7   : > { %v1385_v51 = vsel %vm1011_vm7, %v1378_v30, %v1379_v43 }
 0x1f8   : > { %v1386_v52 = vsel %vm1383_vm13, %v3029_v32, %v1385_v51 }
 0x1f9   : > { %1396 = vst [vmem:[#allocation3 + $0x48] sm:$0xcc] %v1386_v52  ;;  %v3134_v53 = vpop.permute.xlu1 %1272 }
 0x1fa   : > { %v1280_v50 = vrot.slane %v3134_v53, 4 }
 0x1fb   : > { %v1458_v54 = vpop.permute.xlu2 %1457 }
 0x1fc   : > { %v1286_v48 = vsel %vm1011_vm7, %v1279_v0, %v1280_v50  ;;  %v1464_v55 = vrot.slane %v1458_v54, 4 }
 0x1fd   : > { %v1287_v56 = vsel %vm1284_vm3, %v3073_v27, %v1286_v48  ;;  %v1543_v30 = vld [vmem:[#allocation3 + $0x88] sm:$0x33] }
 0x1fe   : > { %1297 = vst [vmem:[#allocation3 + $0x28] sm:$0xcc] %v1287_v56  ;;  %v1606_v26 = vunpack.c.l.b16 %v1543_v30  ;;  %v1607_v32 = vunpack.c.h.b16 %v1543_v30  ;;  %v1471_v57 = vsel %vm1011_vm7, %v1463_v14, %v1464_v55 }
 0x1ff   : > { %v1472_v58 = vsel %vm1467_vm14, %v1456_v16, %v1471_v57  ;;  %v1546_v57 = vld [vmem:[%s3246_s6] sm:$0xff] }
 0x200   : > { %v1630_v59 = vpack.c.b16 %v1606_v26, %v1606_v26  ;;  %v1631_v3 = vpack.c.b16 %v1607_v32, %v1607_v32  ;;  %1481 = vst [vmem:[#allocation3 + $0x70] sm:$0xcc] %v1472_v58  ;;  %v1918_v0 = vld [vmem:[#allocation3 + $0x48] sm:$0xf]  ;;  %v1962_v6 = vld [vmem:[#allocation3 + $0x4c] sm:$0xf]  ;;  %1549 = vperm.xlu1 %1987, %v1546_v57  }
 0x201   : > { %v1919_v13 = vor.u32 %v1966_v8, %v1918_v0  ;;  %v1923_v15 = vor.u32 %v1962_v6, %v1920_v11 }
 0x202   : > { %v1664_v4 = vsel %vm1656_vm4, %v1630_v59, 0  ;;  %v1667_v5 = vsel %vm1656_vm4, %v1631_v3, 0 }
 0x203   : > { %1712 = vmatpush.bf16.msra.mxu2 %v1664_v4  ;;  %1725 = vmatpush.bf16.msra.mxu3 %v1667_v5  ;;  %v1327_v27 = vpop.permute.xlu2 %1326 }
 0x204   : > { %v1333_v12 = vrot.slane %v1327_v27, 4 }
 0x205   : > { %v1958_v14 = vld [vmem:[#allocation3 + $0x24] sm:$0xf0]  ;;  %v1888_v19 = vld [vmem:[#allocation3 + $0x28] sm:$0xf0] }
 0x206   : > { %v1340_v16 = vsel %vm1011_vm7, %v1332_v38, %v1333_v12  ;;  %v1887_v24 = vor.u32 %v1958_v14, %v1886_v23  ;;  %v1891_v25 = vor.u32 %v1954_v28, %v1888_v19 }
 0x207   : > { %1713 = vmatpush.bf16.msra.mxu2 %v1919_v13  ;;  %1726 = vmatpush.bf16.msra.mxu3 %v1923_v15  ;;  %v1341_v20 = vsel %vm1336_vm15, %v1325_v36, %v1340_v16 }
 0x208   : > { %1350 = vst [vmem:[#allocation3 + $0x50] sm:$0x33] %v1341_v20 }
 0x20a   : > { %v1460_v29 = vpop.permute.xlu0 %1459 }
 0x20b   : > { %1714 = vmatpush.bf16.msra.mxu2 %v1887_v24  ;;  %1727 = vmatpush.bf16.msra.mxu3 %v1891_v25  ;;  %v1376_v31 = vpop.permute.xlu2 %1375  ;;  %v1465_v33 = vrot.slane %v1460_v29, 4 }
 0x20c   : > { %v1186_v34 = vpop.permute.xlu1 %1185  ;;  %v1381_v58 = vrot.slane %v1376_v31, 4 }
 0x20d   : > { %v1473_v1 = vsel %vm1011_vm7, %v1464_v55, %v1465_v33  ;;  %v1192_v2 = vrot.slane %v1186_v34, 4 }
 0x20e   : > { %1942 = vmatmul.msk.bf16.vlgmr.msra.gmra.mxu2 %vm1652_vm5, %v3153_v35  ;;  %1943 = vmatmul.msk.bf16.vlgmr.msra.gmra.mxu3 %vm1652_vm5, %v3153_v35  ;;  %v1474_v10 = vsel %vm1467_vm14, %v1458_v54, %v1473_v1 }
 0x20f   : > { %1482 = vst [vmem:[#allocation3 + $0x78] sm:$0xcc] %v1474_v10  ;;  %v1199_v37 = vsel %vm1011_vm7, %v1191_v22, %v1192_v2  ;;  %v1201_v36 = vsel %vm1011_vm7, %v1192_v2, %v1193_v9 }
 0x210   : > { %v1200_v38 = vsel %vm1195_vm12, %v3090_v17, %v1199_v37  ;;  %v1202_v39 = vsel %vm1195_vm12, %v1186_v34, %v1201_v36 }
 0x211   : > { %1209 = vst [vmem:[#allocation3 + $0x10] sm:$0xcc] %v1200_v38 }
 0x212   : > { %1210 = vst [vmem:[#allocation3 + $0x18] sm:$0xcc] %v1202_v39  ;;  %v1329_v21 = vpop.permute.xlu0 %1328 }
 0x213   : > { %v3173_v40 = vpop.permute.xlu2 %1274  ;;  %v1334_v62 = vrot.slane %v1329_v21, 4 }
 0x214   : > { %v1281_v42 = vrot.slane %v3173_v40, 4  ;;  %v1502_v18 = vpop.permute.xlu1 %1501 }
 0x215   : > { %v1342_v7 = vsel %vm1011_vm7, %v1333_v12, %v1334_v62  ;;  %v1507_v51 = vrot.slane %v1502_v18, 4 }
 0x216   : > { %v1288_v22 = vsel %vm1011_vm7, %v1280_v50, %v1281_v42  ;;  %v1343_v47 = vsel %vm1336_vm15, %v1327_v27, %v1342_v7 }
 0x217   : > { %v1289_v17 = vsel %vm1284_vm3, %v3134_v53, %v1288_v22  ;;  %1351 = vst [vmem:[#allocation3 + $0x58] sm:$0x33] %v1343_v47 }
 0x218   : > { %1298 = vst [vmem:[#allocation3 + $0x30] sm:$0xcc] %v1289_v17  ;;  %v1894_v47 = vld [vmem:[#allocation3 + $0x10] sm:$0xf] }
 0x21a   : > { %v1500_v41 = vpop.permute.xlu0 %1499 }
 0x21b   : > { %v1506_v52 = vrot.slane %v1500_v41, 4 }
 0x21c   : > { %v1418_v54 = vpop.permute.xlu1 %1417 }
 0x21d   : > { %v1513_v48 = vsel %vm1011_vm7, %v1505_v46, %v1506_v52  ;;  %v1515_v55 = vsel %vm1011_vm7, %v1506_v52, %v1507_v51  ;;  %v1423_v30 = vrot.slane %v1418_v54, 4  ;;  %v1955_v52 = vld [vmem:[#allocation3 + $0x14] sm:$0xf] }
 0x21e   : > { %v1514_v50 = vsel %vm1509_vm1, %v3112_v44, %v1513_v48  ;;  %v1516_v56 = vsel %vm1509_vm1, %v1500_v41, %v1515_v55 }
 0x21f   : > { %1523 = vst [vmem:[#allocation3 + $0x90] sm:$0x33] %v1514_v50  ;;  %v1902_v50 = vld [vmem:[#allocation3 + $0x18] sm:$0xf] }
 0x220   : > { %1524 = vst [vmem:[#allocation3 + $0x98] sm:$0x33] %v1516_v56  ;;  %v1956_v56 = vld [vmem:[#allocation3 + $0x1c] sm:$0xf] }
 0x222   : > { %v1416_v53 = vpop.permute.xlu0 %1415 }
 0x223   : > { %v1422_v26 = vrot.slane %v1416_v53, 4 }
 0x224   : > { %v1374_v32 = vpop.permute.xlu1 %1373 }
 0x225   : > { %v1429_v46 = vsel %vm1011_vm7, %v1421_v63, %v1422_v26  ;;  %v1431_v59 = vsel %vm1011_vm7, %v1422_v26, %v1423_v30  ;;  %v1380_v44 = vrot.slane %v1374_v32, 4 }
 0x226   : > { %v1430_v3 = vsel %vm1425_vm0, %v3054_v45, %v1429_v46  ;;  %v1432_v4 = vsel %vm1425_vm0, %v1416_v53, %v1431_v59  ;;  %v1544_v5 = vld [vmem:[#allocation3 + $0x90] sm:$0x33] }
 0x227   : > { %1439 = vst [vmem:[#allocation3 + $0x70] sm:$0x33] %v1430_v3  ;;  %v1387_v0 = vsel %vm1011_vm7, %v1379_v43, %v1380_v44  ;;  %v1389_v6 = vsel %vm1011_vm7, %v1380_v44, %v1381_v58  ;;  %v1608_v27 = vunpack.c.l.b16 %v1544_v5  ;;  %v1609_v8 = vunpack.c.h.b16 %v1544_v5  ;;  %v1545_v63 = vld [vmem:[#allocation3 + $0x98] sm:$0x33] }
 0x228   : > { %1440 = vst [vmem:[#allocation3 + $0x78] sm:$0x33] %v1432_v4  ;;  %v1388_v11 = vsel %vm1383_vm13, %v3122_v49, %v1387_v0  ;;  %v1390_v12 = vsel %vm1383_vm13, %v1374_v32, %v1389_v6  ;;  %v1610_v45 = vunpack.c.l.b16 %v1545_v63  ;;  %v1611_v13 = vunpack.c.h.b16 %v1545_v63 }
 0x229   : > { %1397 = vst [vmem:[#allocation3 + $0x50] sm:$0xcc] %v1388_v11  ;;  %v1632_v15 = vpack.c.b16 %v1608_v27, %v1608_v27  ;;  %v1633_v14 = vpack.c.b16 %v1609_v8, %v1609_v8 }
 0x22a   : > { %1398 = vst [vmem:[#allocation3 + $0x58] sm:$0xcc] %v1390_v12  ;;  %v1228_v19 = vpop.permute.xlu0 %1227  ;;  %v1634_v16 = vpack.c.b16 %v1610_v45, %v1610_v45  ;;  %v1635_v43 = vpack.c.b16 %v1611_v13, %v1611_v13 }
 0x22b   : > { %v1234_v20 = vrot.slane %v1228_v19, 4  ;;  %v1670_v23 = vsel %vm1656_vm4, %v1632_v15, 0  ;;  %v1673_v28 = vsel %vm1656_vm4, %v1633_v14, 0 }
 0x22c   : > { %v1230_v24 = vpop.permute.xlu1 %1229  ;;  %1738 = vmatpush.bf16.msrb.mxu0 %v1670_v23  ;;  %1751 = vmatpush.bf16.msrb.mxu1 %v1673_v28  ;;  %v1676_v49 = vsel %vm1656_vm4, %v1634_v16, 0  ;;  %v1679_v25 = vsel %vm1656_vm4, %v1635_v43, 0 }
 0x22d   : > { %v1241_v31 = vsel %vm1011_vm7, %v1233_v61, %v1234_v20  ;;  %v1235_v29 = vrot.slane %v1230_v24, 4  ;;  %1764 = vmatpush.bf16.msrb.mxu2 %v1676_v49  ;;  %1777 = vmatpush.bf16.msrb.mxu3 %v1679_v25 }
 0x22e   : > { %v1242_v33 = vsel %vm1237_vm2, %v3075_v60, %v1241_v31  ;;  %v1967_v34 = vld [vmem:[#allocation3 + $0x6c] sm:$0xf0]  ;;  %v1928_v1 = vld [vmem:[#allocation3 + $0x70] sm:$0xf0] }
 0x22f   : > { %1251 = vst [vmem:[#allocation3 + $0x30] sm:$0x33] %v1242_v33  ;;  %v1243_v9 = vsel %vm1011_vm7, %v1234_v20, %v1235_v29  ;;  %v1968_v2 = vld [vmem:[#allocation3 + $0x74] sm:$0xf0]  ;;  %v1936_v38 = vld [vmem:[#allocation3 + $0x78] sm:$0xf0] }
 0x230   : > { %v1244_v10 = vsel %vm1237_vm2, %v1228_v19, %v1243_v9  ;;  %v1926_v37 = vld [vmem:[#allocation3 + $0x50] sm:$0xf]  ;;  %v1963_v36 = vld [vmem:[#allocation3 + $0x54] sm:$0xf] }
 0x231   : > { %1252 = vst [vmem:[#allocation3 + $0x38] sm:$0x33] %v1244_v10  ;;  %v1927_v39 = vor.u32 %v1967_v34, %v1926_v37  ;;  %v1931_v61 = vor.u32 %v1963_v36, %v1928_v1  ;;  %v1934_v21 = vld [vmem:[#allocation3 + $0x58] sm:$0xf]  ;;  %v1964_v62 = vld [vmem:[#allocation3 + $0x5c] sm:$0xf] }
 0x232   : > { %v1277_v18 = vpop.permute.xlu0 %1276  ;;  %v1935_v22 = vor.u32 %v1968_v2, %v1934_v21  ;;  %v1939_v7 = vor.u32 %v1964_v62, %v1936_v38 }
 0x233   : > { %v1282_v60 = vrot.slane %v1277_v18, 4  ;;  %1739 = vmatpush.bf16.msrb.mxu0 %v1927_v39  ;;  %1752 = vmatpush.bf16.msrb.mxu1 %v1931_v61 }
 0x234   : > { %1765 = vmatpush.bf16.msrb.mxu2 %v1935_v22  ;;  %1778 = vmatpush.bf16.msrb.mxu3 %v1939_v7 }
 0x235   : > { %v1290_v17 = vsel %vm1011_vm7, %v1281_v42, %v1282_v60 }
 0x236   : > { %v1291_v41 = vsel %vm1284_vm3, %v3173_v40, %v1290_v17  ;;  %v1959_v51 = vld [vmem:[#allocation3 + $0x2c] sm:$0xf0]  ;;  %v1896_v54 = vld [vmem:[#allocation3 + $0x30] sm:$0xf0] }
 0x237   : > { %1299 = vst [vmem:[#allocation3 + $0x38] sm:$0xcc] %v1291_v41  ;;  %v1895_v48 = vor.u32 %v1959_v51, %v1894_v47  ;;  %v1899_v55 = vor.u32 %v1955_v52, %v1896_v54 }
 0x239   : > { %1740 = vmatpush.bf16.msrb.mxu0 %v1895_v48  ;;  %1753 = vmatpush.bf16.msrb.mxu1 %v1899_v55 }
 0x23c   : > { %1944 = vmatmul.msk.bf16.vlgmr.msrb.gmra.mxu0 %vm1652_vm5, %v3153_v35  ;;  %1945 = vmatmul.msk.bf16.vlgmr.msrb.gmra.mxu1 %vm1652_vm5, %v3153_v35 }
 0x23e   : > { %v1960_v42 = vld [vmem:[#allocation3 + $0x34] sm:$0xf0]  ;;  %v1904_v53 = vld [vmem:[#allocation3 + $0x38] sm:$0xf0] }
 0x23f   : > { %v1903_v40 = vor.u32 %v1960_v42, %v1902_v50  ;;  %v1907_v30 = vor.u32 %v1956_v56, %v1904_v53 }
 0x241   : > { %1766 = vmatpush.bf16.msrb.mxu2 %v1903_v40  ;;  %1779 = vmatpush.bf16.msrb.mxu3 %v1907_v30 }
 0x244   : > { %1946 = vmatmul.msk.bf16.vlgmr.msrb.gmra.mxu2 %vm1652_vm5, %v3153_v35  ;;  %1947 = vmatmul.msk.bf16.vlgmr.msrb.gmra.mxu3 %vm1652_vm5, %v3153_v35 }
 0x26b   : > { %v1690_v26 = vpop.f32.mrf.mxu0  ;;  %v1703_v32 = vpop.f32.mrf.mxu1 }
 0x272   : > { %v1550_v44 = vpop.permute.xlu1 %1549 }
 0x273   : > { %v1692_v46 = vpop.f32.mrf.mxu0  ;;  %v1705_v59 = vpop.f32.mrf.mxu1  ;;  %v1691_v3 = vadd.f32 %v1690_v26, %v1550_v44  ;;  %v1704_v4 = vadd.f32 %v1703_v32, %v1550_v44 }
 0x275   : > { %1785 = vst [vmem:[%s298_s22] sm:$0xff] %v1691_v3 }
 0x276   : > { %1786 = vst [vmem:[%s298_s22 + $0x8] sm:$0xff] %v1704_v4 }
 0x291   : > { %v1716_v57 = vpop.f32.mrf.mxu2  ;;  %v1729_v58 = vpop.f32.mrf.mxu3 }
 0x292   : > { %v1717_v5 = vadd.f32 %v1716_v57, %v1550_v44  ;;  %v1730_v27 = vadd.f32 %v1729_v58, %v1550_v44 }
 0x294   : > { %1787 = vst [vmem:[%s298_s22 + $0x10] sm:$0xff] %v1717_v5 }
 0x295   : > { %1788 = vst [vmem:[%s298_s22 + $0x18] sm:$0xff] %v1730_v27 }
 0x299   : > { %v1718_v0 = vpop.f32.mrf.mxu2  ;;  %v1731_v6 = vpop.f32.mrf.mxu3 }
 0x2b9   : > { %v1742_v35 = vpop.f32.mrf.mxu0  ;;  %v1755_v8 = vpop.f32.mrf.mxu1 }
 0x2ba   : > { %v1743_v63 = vadd.f32 %v1742_v35, %v1550_v44  ;;  %v1756_v11 = vadd.f32 %v1755_v8, %v1550_v44 }
 0x2bc   : > { %1789 = vst [vmem:[%s298_s22 + $0x20] sm:$0xff] %v1743_v63 }
 0x2bd   : > { %1790 = vst [vmem:[%s298_s22 + $0x28] sm:$0xff] %v1756_v11 }
 0x2c1   : > { %v1744_v12 = vpop.f32.mrf.mxu0  ;;  %v1757_v45 = vpop.f32.mrf.mxu1 }
 0x2c7   : > { %v1768_v13 = vpop.f32.mrf.mxu2  ;;  %v1781_v15 = vpop.f32.mrf.mxu3 }
 0x2c8   : > { %v1769_v14 = vadd.f32 %v1768_v13, %v1550_v44  ;;  %v1782_v19 = vadd.f32 %v1781_v15, %v1550_v44 }
 0x2ca   : > { %1791 = vst [vmem:[%s298_s22 + $0x30] sm:$0xff] %v1769_v14 }
 0x2cb   : > { %1792 = vst [vmem:[%s298_s22 + $0x38] sm:$0xff] %v1782_v19 }
 0x2cf   : > { %v1770_v16 = vpop.f32.mrf.mxu2  ;;  %v1783_v43 = vpop.f32.mrf.mxu3 }
 0x2d0 PF: > { %s17_s24 = sadd.s32 1, %s1995_s24  }
 0x2d1   : > { %p14_p4 = scmp.ge.s32.totalorder %s17_s24, 4  }
 0x2d3   :  { %16 = sbr.rel (!%p14_p4) target bundleno = 1 (0x1), region = 84 }

</bundles_post_ra>
